<compile_context>
chip_gen: v5e
topology: v5e:2x2
jax: 0.10.0
libtpu: 0.0.40
codegen_flags: <defaults>
</compile_context>

<pallas_src>
import math

import jax
import jax.numpy as jnp
from jax.experimental import pallas as pl
from jax.experimental.pallas import tpu as pltpu

# ----------------------------- configuration ---------------------------------------
B = 2                        # batch
Z_DIM = 16
C_DIM = 0
W_DIM = 32
IMG_RESOLUTION = 4
IMG_CHANNELS = 3
NUM_LAYERS = 8               # mapping depth
OUT_NUM_LAYERS = 8
M_W_DIM = W_DIM // OUT_NUM_LAYERS          # 4
NUM_WS = 2                   # SynthesisNetwork(img_resolution=4): 1 conv + 1 torgb
LR_MULT = 0.01               # mapping lr_multiplier
SYN_C = 32                   # synthesis channels at 4x4
HID = Z_DIM * M_W_DIM        # 64 : lane-dense mapping activation width
SPATIAL = IMG_RESOLUTION * IMG_RESOLUTION  # 16
KW = 9 * SYN_C               # 288 : kernel-major flattened conv width
assert Z_DIM == NUM_WS * OUT_NUM_LAYERS
assert W_DIM % OUT_NUM_LAYERS == 0

# -------- packed parameter buffer "A" (lane width HID = 64), row offsets ------------
R_W0 = 0                                            # (Z_DIM, HID)   mapping layer 0
R_B0 = R_W0 + Z_DIM                                 # (1, HID)
R_WREST = R_B0 + 1                                  # (7*HID, HID)   mapping layers 1..7
R_BREST = R_WREST + (NUM_LAYERS - 1) * HID          # (7, HID)
R_SEL = R_BREST + (NUM_LAYERS - 1)                  # (8, HID)       diagonal select mask
R_AFFRGBW = R_SEL + NUM_LAYERS                      # (HID, C)       ToRGB affine (padded)
R_AFFRGBB = R_AFFRGBW + HID                         # (1, C)
R_CONVB = R_AFFRGBB + 1                             # (1, C)         conv bias row
R_RGBW = R_CONVB + 1                                # (3, C)         ToRGB weight
R_RGBB = R_RGBW + IMG_CHANNELS                      # (1, 3)         ToRGB bias row
R_SELB = R_RGBB + 1                                 # (B*SPATIAL, B) batch-selection
PA_ROWS = ((R_SELB + B * SPATIAL + 7) // 8) * 8     # 584

# -------- packed parameter buffer "B" (lane width 9*C = 288), row offsets -----------
R_AFF1W = 0                                         # (HID, 9C)  conv affine, 9x pre-tiled
R_AFF1B = R_AFF1W + HID                             # (1, 9C)
R_W1 = R_AFF1B + 1                                  # (C, 9C)    conv weight, kernel-major
R_W1SQ = R_W1 + SYN_C                               # (C, 9C)    conv weight squared
R_PATCH = R_W1SQ + SYN_C                            # (B*SPATIAL, 9C) im2col, batch-tiled
PB_ROWS = ((R_PATCH + B * SPATIAL + 7) // 8) * 8    # 168

_NT = (((1,), (1,)), ((), ()))                      # contract last dim of both operands


# ----------------------------- fused Pallas kernel ----------------------------------
def _generator_kernel(z_ref, pa_ref, pb_ref, out_ref):
    sqrt2 = math.sqrt(2.0)

    def lrelu(v):
        return jnp.maximum(v, 0.2 * v) * sqrt2       # bias_act 'lrelu' (gain sqrt(2))

    f32 = jnp.float32

    # ---- mapping: 8 GroupFullyConnectedLayers as block-diagonal dense matmuls -------
    z = z_ref[...]                                   # (B, Z_DIM)
    mask = pa_ref[R_SEL:R_SEL + NUM_LAYERS, :]       # (8, HID) diagonal selection

    x = lrelu(jnp.dot(z, pa_ref[R_W0:R_W0 + Z_DIM, :], preferred_element_type=f32)
              + pa_ref[R_B0:R_B0 + 1, :])            # (B, HID)
    sel = x * mask[0:1, :]                           # running diagonal ws extraction
    for l in range(NUM_LAYERS - 1):                  # activation stays resident in VMEM
        w = pa_ref[R_WREST + l * HID:R_WREST + (l + 1) * HID, :]
        b = pa_ref[R_BREST + l:R_BREST + l + 1, :]
        x = lrelu(jnp.dot(x, w, preferred_element_type=f32) + b)
        sel = sel + x * mask[l + 1:l + 2, :]
    # sel == [ws0 | ws1] (B, 64); affine weights are zero-padded so no slicing needed.

    # ---- affine layers (9x style repeat pre-folded into the conv affine weight) -----
    s1rep = jnp.dot(sel, pb_ref[R_AFF1W:R_AFF1W + HID, :],
                    preferred_element_type=f32) + pb_ref[R_AFF1B:R_AFF1B + 1, :]   # (B, 9C)
    srgb = jnp.dot(sel, pa_ref[R_AFFRGBW:R_AFFRGBW + HID, 0:SYN_C],
                   preferred_element_type=f32) \
        + pa_ref[R_AFFRGBB:R_AFFRGBB + 1, 0:SYN_C]   # (B, C), ToRGB gain pre-folded

    # ---- modulated + demodulated 3x3 conv ------------------------------------------
    # Rows are (batch, pixel); out-channels stay in lanes, so all per-(b, o) factors
    # are lane-aligned.  Modulation is applied to the batch-tiled patches.
    selb = pa_ref[R_SELB:R_SELB + B * SPATIAL, 0:B]  # (B*16, B) batch one-hot expander
    patches = pb_ref[R_PATCH:R_PATCH + B * SPATIAL, :]          # (B*16, 9C) batch-tiled
    s1full = jnp.dot(selb, s1rep, preferred_element_type=f32)   # (B*16, 9C)
    pstack = patches * s1full                                   # modulated patches
    w1 = pb_ref[R_W1:R_W1 + SYN_C, :]                           # (C, 9C)
    y = jax.lax.dot_general(pstack, w1, _NT,
                            preferred_element_type=f32)         # (B*16, C) un-demod conv

    # demod factor, factorized + applied AFTER the conv dot:
    #   d[b,o] = rsqrt(sum_j (s1rep[b,j]*w1[o,j])^2 + eps) = rsqrt(s1rep^2 @ (w1^2)^T + eps)
    w1sq = pb_ref[R_W1SQ:R_W1SQ + SYN_C, :]                     # (C, 9C)
    dd = jax.lax.dot_general(s1rep * s1rep, w1sq, _NT,
                             preferred_element_type=f32)        # (B, C)
    d = jax.lax.rsqrt(dd + 1e-8)                                # (B, C)
    dfull = jnp.dot(selb, d, preferred_element_type=f32)        # (B*16, C)

    b1 = pa_ref[R_CONVB:R_CONVB + 1, 0:SYN_C]                   # (1, C)
    y = lrelu(y * dfull + b1)                                   # (B*16, C)

    # ---- ToRGB: modulated 1x1, no demod ----------------------------------------------
    srgbfull = jnp.dot(selb, srgb, preferred_element_type=f32)  # (B*16, C)
    ymod = y * srgbfull                                         # (B*16, C)
    rgbw = pa_ref[R_RGBW:R_RGBW + IMG_CHANNELS, 0:SYN_C]        # (3, C)
    rgbb = pa_ref[R_RGBB:R_RGBB + 1, 0:IMG_CHANNELS]            # (1, 3)
    rgb = jax.lax.dot_general(ymod, rgbw, _NT,
                              preferred_element_type=f32) + rgbb  # (B*16, 3)
    out_ref[...] = rgb.astype(out_ref.dtype)


def _full_spec(shape):
    nd = len(shape)
    return pl.BlockSpec(shape, lambda i, _nd=nd: (0,) * _nd)


def generator_forward(pre, z):
    bsz = z.shape[0]
    assert bsz == B
    args = (z.astype(jnp.float32), pre["pa"], pre["pb"])
    out = pl.pallas_call(
        _generator_kernel,
        grid=(1,),
        in_specs=[_full_spec(a.shape) for a in args],
        out_specs=_full_spec((B * SPATIAL, IMG_CHANNELS)),
        out_shape=jax.ShapeDtypeStruct((B * SPATIAL, IMG_CHANNELS), jnp.float32),
        compiler_params=pltpu.CompilerParams(dimension_semantics=("arbitrary",)),
        cost_estimate=pl.CostEstimate(flops=900_000, transcendentals=64,
                                      bytes_accessed=344_000),
    )(*args)
    # tiny (96-element) NHWC->NCHW layout fixup outside the kernel
    return out.reshape(bsz, IMG_RESOLUTION, IMG_RESOLUTION,
                       IMG_CHANNELS).transpose(0, 3, 1, 2)


# ----------------------------- parameters ------------------------------------------
def init_params(key):
    ks = jax.random.split(key, 16)
    p = {}
    # mapping: GroupFullyConnectedLayer x NUM_LAYERS (share_zw=False, c_dim=0)
    feats = [1] + [M_W_DIM] * NUM_LAYERS
    maps = []
    for idx in range(NUM_LAYERS):
        pin, pout = feats[idx], feats[idx + 1]
        # torch: weight = randn([groups, per_in, per_out]) / lr_mult ; bias = zeros
        w_raw = jax.random.normal(ks[idx], (Z_DIM, pin, pout), jnp.float32) / LR_MULT
        weight_gain = LR_MULT / math.sqrt(pin)
        w_eff = w_raw * weight_gain
        b_eff = jnp.zeros((Z_DIM, pout), jnp.float32)     # bias_init=0, *bias_gain
        maps.append((w_eff, b_eff))
    p["mapping"] = maps

    c = SYN_C
    # SynthesisLayer (conv1): affine(w_dim->C, bias_init=1), weight (C,C,3,3), bias (C,)
    p["aff1_w"] = jax.random.normal(ks[8], (c, W_DIM), jnp.float32).T / math.sqrt(W_DIM)
    p["aff1_b"] = jnp.ones((c,), jnp.float32)
    p["conv1_w"] = jax.random.normal(ks[9], (c, c, 3, 3), jnp.float32)
    p["conv1_b"] = jnp.zeros((c,), jnp.float32)
    # ToRGBLayer: affine(w_dim->C, bias_init=1), weight (3,C,1,1), bias (3,)
    p["affrgb_w"] = jax.random.normal(ks[10], (c, W_DIM), jnp.float32).T / math.sqrt(W_DIM)
    p["affrgb_b"] = jnp.ones((c,), jnp.float32)
    p["rgb_w"] = jax.random.normal(ks[11], (IMG_CHANNELS, c, 1, 1), jnp.float32)
    p["rgb_b"] = jnp.zeros((IMG_CHANNELS,), jnp.float32)
    # const input of the 4x4 block
    p["const"] = jax.random.normal(ks[12], (c, 4, 4), jnp.float32)
    return p


def preprocess_params(params):
    """One-time param preprocessing: block-diagonalization, im2col, 9x pre-tiling,
    batch tiling and packing of everything into two lane-dense DMA buffers."""
    c = SYN_C
    eye_g = jnp.eye(Z_DIM, dtype=jnp.float32)

    # mapping layer 0 (per-group in=1): dense (Z_DIM, HID), W0[g, 4h+o] = d(g,h)*w[g,0,o]
    w0, b0 = params["mapping"][0]
    map_w0 = (eye_g[:, :, None] * w0[:, 0, :][:, None, :]).reshape(Z_DIM, HID)
    map_b0 = b0.reshape(1, HID)
    # layers 1..7: block-diagonal (HID, HID), W[4g+i, 4h+o] = d(g,h)*w[g,i,o]
    wrest, brest = [], []
    for (w, b_) in params["mapping"][1:]:
        wrest.append((eye_g[:, None, :, None] * w[:, :, None, :]).reshape(HID, HID))
        brest.append(b_.reshape(1, HID))
    map_wrest = jnp.concatenate(wrest, axis=0)             # (7*HID, HID)
    map_brest = jnp.concatenate(brest, axis=0)             # (7, HID)
    # diagonal-selection mask: sel[b, j] picks layer (j//4)%8 (grid_output eye reduction)
    j = jnp.arange(HID)
    l = jnp.arange(NUM_LAYERS)
    sel_mask = ((j[None, :] // M_W_DIM) % OUT_NUM_LAYERS
                == l[:, None]).astype(jnp.float32)         # (NUM_LAYERS, HID)

    # conv affine, pre-tiled 9x along out dim, zero-padded rows for the ws1 half
    aff1_w9_full = jnp.zeros((HID, KW), jnp.float32).at[:W_DIM].set(
        jnp.tile(params["aff1_w"], (1, 9)))
    aff1_b9 = jnp.tile(params["aff1_b"].reshape(1, c), (1, 9))       # (1, 9C)
    # ToRGB affine with weight_gain 1/sqrt(C) folded in, zero-padded rows for ws0 half
    inv_c = 1.0 / math.sqrt(c)
    affrgb_w_full = jnp.zeros((HID, c), jnp.float32).at[W_DIM:].set(
        params["affrgb_w"] * inv_c)
    affrgb_b = params["affrgb_b"].reshape(1, c) * inv_c

    # conv weight flattened kernel-major: w1[o, k*C + i] = conv1_w[o, i, ky, kx]
    w1 = jnp.transpose(params["conv1_w"], (0, 2, 3, 1)).reshape(c, KW)
    w1sq = w1 * w1
    # im2col of the (batch-shared) const input, lane-dense (SPATIAL, 9C), batch-tiled
    xpad = jnp.pad(params["const"], ((0, 0), (1, 1), (1, 1)))
    cols = jnp.stack([xpad[:, ky:ky + IMG_RESOLUTION, kx:kx + IMG_RESOLUTION]
                      for ky in range(3) for kx in range(3)], axis=0)  # (9, C, 4, 4)
    patches = cols.reshape(KW, SPATIAL).T                  # (16, 9C)
    patches_stk = jnp.tile(patches, (B, 1))                # (B*16, 9C)

    rgbw = params["rgb_w"].reshape(IMG_CHANNELS, c)
    rgbb = params["rgb_b"].reshape(1, IMG_CHANNELS)
    conv1_b = params["conv1_b"].reshape(1, c)
    # batch-selection expander: selb[b*16+s, b'] = 1 iff b'==b
    selb = (jnp.arange(B * SPATIAL)[:, None] // SPATIAL
            == jnp.arange(B)[None, :]).astype(jnp.float32)  # (B*16, B)

    pa = jnp.zeros((PA_ROWS, HID), jnp.float32)
    pa = pa.at[R_W0:R_W0 + Z_DIM, :].set(map_w0)
    pa = pa.at[R_B0, :].set(map_b0[0])
    pa = pa.at[R_WREST:R_WREST + (NUM_LAYERS - 1) * HID, :].set(map_wrest)
    pa = pa.at[R_BREST:R_BREST + NUM_LAYERS - 1, :].set(map_brest)
    pa = pa.at[R_SEL:R_SEL + NUM_LAYERS, :].set(sel_mask)
    pa = pa.at[R_AFFRGBW:R_AFFRGBW + HID, :c].set(affrgb_w_full)
    pa = pa.at[R_AFFRGBB, :c].set(affrgb_b[0])
    pa = pa.at[R_CONVB, :c].set(conv1_b[0])
    pa = pa.at[R_RGBW:R_RGBW + IMG_CHANNELS, :c].set(rgbw)
    pa = pa.at[R_RGBB, :IMG_CHANNELS].set(rgbb[0])
    pa = pa.at[R_SELB:R_SELB + B * SPATIAL, :B].set(selb)

    pb = jnp.zeros((PB_ROWS, KW), jnp.float32)
    pb = pb.at[R_AFF1W:R_AFF1W + HID, :].set(aff1_w9_full)
    pb = pb.at[R_AFF1B, :].set(aff1_b9[0])
    pb = pb.at[R_W1:R_W1 + c, :].set(w1)
    pb = pb.at[R_W1SQ:R_W1SQ + c, :].set(w1sq)
    pb = pb.at[R_PATCH:R_PATCH + B * SPATIAL, :].set(patches_stk)

    return {"pa": pa, "pb": pb}


# ----------------------------- pure-JAX reference (for validation) ------------------
def reference_forward(params, z):
    bsz = z.shape[0]
    x = z.reshape(bsz, Z_DIM, 1).astype(jnp.float32)
    outs = []
    for (w_eff, b_eff) in params["mapping"]:
        y = jnp.einsum("bgi,gio->bgo", x, w_eff) + b_eff[None]
        x = jnp.where(y >= 0.0, y, 0.2 * y) * math.sqrt(2.0)
        outs.append(x.reshape(bsz, Z_DIM, 1, M_W_DIM))
    grid = jnp.concatenate(outs, axis=2)
    L = OUT_NUM_LAYERS
    grid5 = grid.reshape(bsz, NUM_WS, L, L, M_W_DIM)
    mask = jnp.eye(L, dtype=grid5.dtype).reshape(1, 1, L, L, 1)
    ws = (mask * grid5).sum(axis=3).reshape(bsz, NUM_WS, W_DIM)
    c = SYN_C
    s1 = ws[:, 0, :] @ params["aff1_w"] + params["aff1_b"]
    srgb = (ws[:, 1, :] @ params["affrgb_w"] + params["affrgb_b"]) / math.sqrt(c)
    w = params["conv1_w"][None] * s1[:, None, :, None, None]
    d = jax.lax.rsqrt(jnp.sum(w * w, axis=(2, 3, 4)) + 1e-8)
    w = w * d[:, :, None, None, None]
    xin = jnp.broadcast_to(params["const"][None], (bsz, c, 4, 4))

    def conv_one(xi, wi):
        return jax.lax.conv_general_dilated(
            xi[None], wi, (1, 1), "SAME",
            dimension_numbers=("NCHW", "OIHW", "NCHW"))[0]

    y = jax.vmap(conv_one)(xin, w) + params["conv1_b"].reshape(1, c, 1, 1)
    y = jnp.where(y >= 0.0, y, 0.2 * y) * math.sqrt(2.0)
    wr = params["rgb_w"][None, :, :, 0, 0] * srgb[:, None, :]
    img = jnp.einsum("boc,bchw->bohw", wr, y) + params["rgb_b"].reshape(1, IMG_CHANNELS, 1, 1)
    return img


# ----------------------------- main --------------------------------------------------
if __name__ == "__main__":
    key = jax.random.PRNGKey(0)
    kp, kz = jax.random.split(key)
    params = init_params(kp)
    pre = preprocess_params(params)      # hoisted: block-diag, im2col, tiling, packing
    z = jax.random.normal(kz, (B, Z_DIM), jnp.float32)   # c_dim = 0 -> no label input

    fwd = jax.jit(generator_forward)
    img = jax.block_until_ready(fwd(pre, z))

    assert img.shape == (B, IMG_CHANNELS, IMG_RESOLUTION, IMG_RESOLUTION)
    ref = reference_forward(params, z)
    err = float(jnp.max(jnp.abs(img - ref)))
    assert err < 1e-3, f"kernel/reference mismatch: {err}"
    print("KERNEL_OK")
</pallas_src>

<mosaic_0001>
module attributes {stable_mosaic.version = 11 : i64} {
  func.func @_generator_kernel(%arg0: i32, %arg1: memref<2x16xf32, #tpu.memory_space<vmem>>, %arg2: memref<584x64xf32, #tpu.memory_space<vmem>>, %arg3: memref<168x288xf32, #tpu.memory_space<vmem>>, %arg4: memref<32x3xf32, #tpu.memory_space<vmem>>) attributes {dimension_semantics = [#tpu.dimension_semantics<arbitrary>], iteration_bounds = array<i64: 1>, scalar_prefetch = 0 : i64, scratch_operands = 0 : i64, tpu.core_type = #tpu.core_type<tc>, window_params = [{pipeline_mode = #tpu.pipeline_mode<synchronous>, transform_indices = @transform_0, window_bounds = array<i64: 2, 16>}, {pipeline_mode = #tpu.pipeline_mode<synchronous>, transform_indices = @transform_1, window_bounds = array<i64: 584, 64>}, {pipeline_mode = #tpu.pipeline_mode<synchronous>, transform_indices = @transform_2, window_bounds = array<i64: 168, 288>}, {pipeline_mode = #tpu.pipeline_mode<synchronous>, transform_indices = @transform_3, window_bounds = array<i64: 32, 3>}]} {
    %c0 = arith.constant 0 : index
    %c0_0 = arith.constant 0 : index
    %0 = vector.load %arg1[%c0, %c0_0] : memref<2x16xf32, #tpu.memory_space<vmem>>, vector<2x16xf32>
    %c472 = arith.constant 472 : index
    %c0_1 = arith.constant 0 : index
    %1 = vector.load %arg2[%c472, %c0_1] : memref<584x64xf32, #tpu.memory_space<vmem>>, vector<8x64xf32>
    %c0_2 = arith.constant 0 : index
    %c0_3 = arith.constant 0 : index
    %2 = vector.load %arg2[%c0_2, %c0_3] : memref<584x64xf32, #tpu.memory_space<vmem>>, vector<16x64xf32>
    %cst = arith.constant dense<0.000000e+00> : vector<2x64xf32>
    %3 = tpu.matmul %0, %2, %cst {dimension_numbers = #tpu.dot_dimension_numbers<[1], [0], [0], [1], [0, 0, 1, 1], [], []>} : vector<2x16xf32>, vector<16x64xf32>, vector<2x64xf32> -> vector<2x64xf32>
    %c16 = arith.constant 16 : index
    %c0_4 = arith.constant 0 : index
    %4 = vector.load %arg2[%c16, %c0_4] : memref<584x64xf32, #tpu.memory_space<vmem>>, vector<1x64xf32>
    %5 = vector.broadcast %4 : vector<1x64xf32> to vector<2x64xf32>
    %6 = arith.addf %3, %5 : vector<2x64xf32>
    %cst_5 = arith.constant 2.000000e-01 : f32
    %7 = vector.broadcast %cst_5 : f32 to vector<2x64xf32>
    %8 = arith.mulf %7, %6 : vector<2x64xf32>
    %9 = arith.maximumf %6, %8 : vector<2x64xf32>
    %cst_6 = arith.constant 1.41421354 : f32
    %10 = vector.broadcast %cst_6 : f32 to vector<2x64xf32>
    %11 = arith.mulf %9, %10 : vector<2x64xf32>
    %12 = vector.extract_strided_slice %1 {offsets = [0, 0], sizes = [1, 64], strides = [1, 1]} : vector<8x64xf32> to vector<1x64xf32>
    %13 = vector.broadcast %12 : vector<1x64xf32> to vector<2x64xf32>
    %14 = arith.mulf %11, %13 : vector<2x64xf32>
    %c17 = arith.constant 17 : index
    %c0_7 = arith.constant 0 : index
    %15 = vector.load %arg2[%c17, %c0_7] : memref<584x64xf32, #tpu.memory_space<vmem>>, vector<64x64xf32>
    %c465 = arith.constant 465 : index
    %c0_8 = arith.constant 0 : index
    %16 = vector.load %arg2[%c465, %c0_8] : memref<584x64xf32, #tpu.memory_space<vmem>>, vector<1x64xf32>
    %cst_9 = arith.constant dense<0.000000e+00> : vector<2x64xf32>
    %17 = tpu.matmul %11, %15, %cst_9 {dimension_numbers = #tpu.dot_dimension_numbers<[1], [0], [0], [1], [0, 0, 1, 1], [], []>} : vector<2x64xf32>, vector<64x64xf32>, vector<2x64xf32> -> vector<2x64xf32>
    %18 = vector.broadcast %16 : vector<1x64xf32> to vector<2x64xf32>
    %19 = arith.addf %17, %18 : vector<2x64xf32>
    %cst_10 = arith.constant 2.000000e-01 : f32
    %20 = vector.broadcast %cst_10 : f32 to vector<2x64xf32>
    %21 = arith.mulf %20, %19 : vector<2x64xf32>
    %22 = arith.maximumf %19, %21 : vector<2x64xf32>
    %cst_11 = arith.constant 1.41421354 : f32
    %23 = vector.broadcast %cst_11 : f32 to vector<2x64xf32>
    %24 = arith.mulf %22, %23 : vector<2x64xf32>
    %25 = vector.extract_strided_slice %1 {offsets = [1, 0], sizes = [1, 64], strides = [1, 1]} : vector<8x64xf32> to vector<1x64xf32>
    %26 = vector.broadcast %25 : vector<1x64xf32> to vector<2x64xf32>
    %27 = arith.mulf %24, %26 : vector<2x64xf32>
    %28 = arith.addf %14, %27 : vector<2x64xf32>
    %c81 = arith.constant 81 : index
    %c0_12 = arith.constant 0 : index
    %29 = vector.load %arg2[%c81, %c0_12] : memref<584x64xf32, #tpu.memory_space<vmem>>, vector<64x64xf32>
    %c466 = arith.constant 466 : index
    %c0_13 = arith.constant 0 : index
    %30 = vector.load %arg2[%c466, %c0_13] : memref<584x64xf32, #tpu.memory_space<vmem>>, vector<1x64xf32>
    %cst_14 = arith.constant dense<0.000000e+00> : vector<2x64xf32>
    %31 = tpu.matmul %24, %29, %cst_14 {dimension_numbers = #tpu.dot_dimension_numbers<[1], [0], [0], [1], [0, 0, 1, 1], [], []>} : vector<2x64xf32>, vector<64x64xf32>, vector<2x64xf32> -> vector<2x64xf32>
    %32 = vector.broadcast %30 : vector<1x64xf32> to vector<2x64xf32>
    %33 = arith.addf %31, %32 : vector<2x64xf32>
    %cst_15 = arith.constant 2.000000e-01 : f32
    %34 = vector.broadcast %cst_15 : f32 to vector<2x64xf32>
    %35 = arith.mulf %34, %33 : vector<2x64xf32>
    %36 = arith.maximumf %33, %35 : vector<2x64xf32>
    %cst_16 = arith.constant 1.41421354 : f32
    %37 = vector.broadcast %cst_16 : f32 to vector<2x64xf32>
    %38 = arith.mulf %36, %37 : vector<2x64xf32>
    %39 = vector.extract_strided_slice %1 {offsets = [2, 0], sizes = [1, 64], strides = [1, 1]} : vector<8x64xf32> to vector<1x64xf32>
    %40 = vector.broadcast %39 : vector<1x64xf32> to vector<2x64xf32>
    %41 = arith.mulf %38, %40 : vector<2x64xf32>
    %42 = arith.addf %28, %41 : vector<2x64xf32>
    %c145 = arith.constant 145 : index
    %c0_17 = arith.constant 0 : index
    %43 = vector.load %arg2[%c145, %c0_17] : memref<584x64xf32, #tpu.memory_space<vmem>>, vector<64x64xf32>
    %c467 = arith.constant 467 : index
    %c0_18 = arith.constant 0 : index
    %44 = vector.load %arg2[%c467, %c0_18] : memref<584x64xf32, #tpu.memory_space<vmem>>, vector<1x64xf32>
    %cst_19 = arith.constant dense<0.000000e+00> : vector<2x64xf32>
    %45 = tpu.matmul %38, %43, %cst_19 {dimension_numbers = #tpu.dot_dimension_numbers<[1], [0], [0], [1], [0, 0, 1, 1], [], []>} : vector<2x64xf32>, vector<64x64xf32>, vector<2x64xf32> -> vector<2x64xf32>
    %46 = vector.broadcast %44 : vector<1x64xf32> to vector<2x64xf32>
    %47 = arith.addf %45, %46 : vector<2x64xf32>
    %cst_20 = arith.constant 2.000000e-01 : f32
    %48 = vector.broadcast %cst_20 : f32 to vector<2x64xf32>
    %49 = arith.mulf %48, %47 : vector<2x64xf32>
    %50 = arith.maximumf %47, %49 : vector<2x64xf32>
    %cst_21 = arith.constant 1.41421354 : f32
    %51 = vector.broadcast %cst_21 : f32 to vector<2x64xf32>
    %52 = arith.mulf %50, %51 : vector<2x64xf32>
    %53 = vector.extract_strided_slice %1 {offsets = [3, 0], sizes = [1, 64], strides = [1, 1]} : vector<8x64xf32> to vector<1x64xf32>
    %54 = vector.broadcast %53 : vector<1x64xf32> to vector<2x64xf32>
    %55 = arith.mulf %52, %54 : vector<2x64xf32>
    %56 = arith.addf %42, %55 : vector<2x64xf32>
    %c209 = arith.constant 209 : index
    %c0_22 = arith.constant 0 : index
    %57 = vector.load %arg2[%c209, %c0_22] : memref<584x64xf32, #tpu.memory_space<vmem>>, vector<64x64xf32>
    %c468 = arith.constant 468 : index
    %c0_23 = arith.constant 0 : index
    %58 = vector.load %arg2[%c468, %c0_23] : memref<584x64xf32, #tpu.memory_space<vmem>>, vector<1x64xf32>
    %cst_24 = arith.constant dense<0.000000e+00> : vector<2x64xf32>
    %59 = tpu.matmul %52, %57, %cst_24 {dimension_numbers = #tpu.dot_dimension_numbers<[1], [0], [0], [1], [0, 0, 1, 1], [], []>} : vector<2x64xf32>, vector<64x64xf32>, vector<2x64xf32> -> vector<2x64xf32>
    %60 = vector.broadcast %58 : vector<1x64xf32> to vector<2x64xf32>
    %61 = arith.addf %59, %60 : vector<2x64xf32>
    %cst_25 = arith.constant 2.000000e-01 : f32
    %62 = vector.broadcast %cst_25 : f32 to vector<2x64xf32>
    %63 = arith.mulf %62, %61 : vector<2x64xf32>
    %64 = arith.maximumf %61, %63 : vector<2x64xf32>
    %cst_26 = arith.constant 1.41421354 : f32
    %65 = vector.broadcast %cst_26 : f32 to vector<2x64xf32>
    %66 = arith.mulf %64, %65 : vector<2x64xf32>
    %67 = vector.extract_strided_slice %1 {offsets = [4, 0], sizes = [1, 64], strides = [1, 1]} : vector<8x64xf32> to vector<1x64xf32>
    %68 = vector.broadcast %67 : vector<1x64xf32> to vector<2x64xf32>
    %69 = arith.mulf %66, %68 : vector<2x64xf32>
    %70 = arith.addf %56, %69 : vector<2x64xf32>
    %c273 = arith.constant 273 : index
    %c0_27 = arith.constant 0 : index
    %71 = vector.load %arg2[%c273, %c0_27] : memref<584x64xf32, #tpu.memory_space<vmem>>, vector<64x64xf32>
    %c469 = arith.constant 469 : index
    %c0_28 = arith.constant 0 : index
    %72 = vector.load %arg2[%c469, %c0_28] : memref<584x64xf32, #tpu.memory_space<vmem>>, vector<1x64xf32>
    %cst_29 = arith.constant dense<0.000000e+00> : vector<2x64xf32>
    %73 = tpu.matmul %66, %71, %cst_29 {dimension_numbers = #tpu.dot_dimension_numbers<[1], [0], [0], [1], [0, 0, 1, 1], [], []>} : vector<2x64xf32>, vector<64x64xf32>, vector<2x64xf32> -> vector<2x64xf32>
    %74 = vector.broadcast %72 : vector<1x64xf32> to vector<2x64xf32>
    %75 = arith.addf %73, %74 : vector<2x64xf32>
    %cst_30 = arith.constant 2.000000e-01 : f32
    %76 = vector.broadcast %cst_30 : f32 to vector<2x64xf32>
    %77 = arith.mulf %76, %75 : vector<2x64xf32>
    %78 = arith.maximumf %75, %77 : vector<2x64xf32>
    %cst_31 = arith.constant 1.41421354 : f32
    %79 = vector.broadcast %cst_31 : f32 to vector<2x64xf32>
    %80 = arith.mulf %78, %79 : vector<2x64xf32>
    %81 = vector.extract_strided_slice %1 {offsets = [5, 0], sizes = [1, 64], strides = [1, 1]} : vector<8x64xf32> to vector<1x64xf32>
    %82 = vector.broadcast %81 : vector<1x64xf32> to vector<2x64xf32>
    %83 = arith.mulf %80, %82 : vector<2x64xf32>
    %84 = arith.addf %70, %83 : vector<2x64xf32>
    %c337 = arith.constant 337 : index
    %c0_32 = arith.constant 0 : index
    %85 = vector.load %arg2[%c337, %c0_32] : memref<584x64xf32, #tpu.memory_space<vmem>>, vector<64x64xf32>
    %c470 = arith.constant 470 : index
    %c0_33 = arith.constant 0 : index
    %86 = vector.load %arg2[%c470, %c0_33] : memref<584x64xf32, #tpu.memory_space<vmem>>, vector<1x64xf32>
    %cst_34 = arith.constant dense<0.000000e+00> : vector<2x64xf32>
    %87 = tpu.matmul %80, %85, %cst_34 {dimension_numbers = #tpu.dot_dimension_numbers<[1], [0], [0], [1], [0, 0, 1, 1], [], []>} : vector<2x64xf32>, vector<64x64xf32>, vector<2x64xf32> -> vector<2x64xf32>
    %88 = vector.broadcast %86 : vector<1x64xf32> to vector<2x64xf32>
    %89 = arith.addf %87, %88 : vector<2x64xf32>
    %cst_35 = arith.constant 2.000000e-01 : f32
    %90 = vector.broadcast %cst_35 : f32 to vector<2x64xf32>
    %91 = arith.mulf %90, %89 : vector<2x64xf32>
    %92 = arith.maximumf %89, %91 : vector<2x64xf32>
    %cst_36 = arith.constant 1.41421354 : f32
    %93 = vector.broadcast %cst_36 : f32 to vector<2x64xf32>
    %94 = arith.mulf %92, %93 : vector<2x64xf32>
    %95 = vector.extract_strided_slice %1 {offsets = [6, 0], sizes = [1, 64], strides = [1, 1]} : vector<8x64xf32> to vector<1x64xf32>
    %96 = vector.broadcast %95 : vector<1x64xf32> to vector<2x64xf32>
    %97 = arith.mulf %94, %96 : vector<2x64xf32>
    %98 = arith.addf %84, %97 : vector<2x64xf32>
    %c401 = arith.constant 401 : index
    %c0_37 = arith.constant 0 : index
    %99 = vector.load %arg2[%c401, %c0_37] : memref<584x64xf32, #tpu.memory_space<vmem>>, vector<64x64xf32>
    %c471 = arith.constant 471 : index
    %c0_38 = arith.constant 0 : index
    %100 = vector.load %arg2[%c471, %c0_38] : memref<584x64xf32, #tpu.memory_space<vmem>>, vector<1x64xf32>
    %cst_39 = arith.constant dense<0.000000e+00> : vector<2x64xf32>
    %101 = tpu.matmul %94, %99, %cst_39 {dimension_numbers = #tpu.dot_dimension_numbers<[1], [0], [0], [1], [0, 0, 1, 1], [], []>} : vector<2x64xf32>, vector<64x64xf32>, vector<2x64xf32> -> vector<2x64xf32>
    %102 = vector.broadcast %100 : vector<1x64xf32> to vector<2x64xf32>
    %103 = arith.addf %101, %102 : vector<2x64xf32>
    %cst_40 = arith.constant 2.000000e-01 : f32
    %104 = vector.broadcast %cst_40 : f32 to vector<2x64xf32>
    %105 = arith.mulf %104, %103 : vector<2x64xf32>
    %106 = arith.maximumf %103, %105 : vector<2x64xf32>
    %cst_41 = arith.constant 1.41421354 : f32
    %107 = vector.broadcast %cst_41 : f32 to vector<2x64xf32>
    %108 = arith.mulf %106, %107 : vector<2x64xf32>
    %109 = vector.extract_strided_slice %1 {offsets = [7, 0], sizes = [1, 64], strides = [1, 1]} : vector<8x64xf32> to vector<1x64xf32>
    %110 = vector.broadcast %109 : vector<1x64xf32> to vector<2x64xf32>
    %111 = arith.mulf %108, %110 : vector<2x64xf32>
    %112 = arith.addf %98, %111 : vector<2x64xf32>
    %c0_42 = arith.constant 0 : index
    %c0_43 = arith.constant 0 : index
    %113 = vector.load %arg3[%c0_42, %c0_43] : memref<168x288xf32, #tpu.memory_space<vmem>>, vector<64x288xf32>
    %cst_44 = arith.constant dense<0.000000e+00> : vector<2x288xf32>
    %114 = tpu.matmul %112, %113, %cst_44 {dimension_numbers = #tpu.dot_dimension_numbers<[1], [0], [0], [1], [0, 0, 1, 1], [], []>} : vector<2x64xf32>, vector<64x288xf32>, vector<2x288xf32> -> vector<2x288xf32>
    %c64 = arith.constant 64 : index
    %c0_45 = arith.constant 0 : index
    %115 = vector.load %arg3[%c64, %c0_45] : memref<168x288xf32, #tpu.memory_space<vmem>>, vector<1x288xf32>
    %116 = vector.broadcast %115 : vector<1x288xf32> to vector<2x288xf32>
    %117 = arith.addf %114, %116 : vector<2x288xf32>
    %c480 = arith.constant 480 : index
    %c0_46 = arith.constant 0 : index
    %118 = vector.load %arg2[%c480, %c0_46] : memref<584x64xf32, #tpu.memory_space<vmem>>, vector<64x32xf32>
    %cst_47 = arith.constant dense<0.000000e+00> : vector<2x32xf32>
    %119 = tpu.matmul %112, %118, %cst_47 {dimension_numbers = #tpu.dot_dimension_numbers<[1], [0], [0], [1], [0, 0, 1, 1], [], []>} : vector<2x64xf32>, vector<64x32xf32>, vector<2x32xf32> -> vector<2x32xf32>
    %c544 = arith.constant 544 : index
    %c0_48 = arith.constant 0 : index
    %120 = vector.load %arg2[%c544, %c0_48] : memref<584x64xf32, #tpu.memory_space<vmem>>, vector<1x32xf32>
    %121 = vector.broadcast %120 : vector<1x32xf32> to vector<2x32xf32>
    %122 = arith.addf %119, %121 : vector<2x32xf32>
    %c550 = arith.constant 550 : index
    %c0_49 = arith.constant 0 : index
    %123 = vector.load %arg2[%c550, %c0_49] : memref<584x64xf32, #tpu.memory_space<vmem>>, vector<32x2xf32>
    %c129 = arith.constant 129 : index
    %c0_50 = arith.constant 0 : index
    %124 = vector.load %arg3[%c129, %c0_50] : memref<168x288xf32, #tpu.memory_space<vmem>>, vector<32x288xf32>
    %cst_51 = arith.constant dense<0.000000e+00> : vector<32x288xf32>
    %125 = tpu.matmul %123, %117, %cst_51 {dimension_numbers = #tpu.dot_dimension_numbers<[1], [0], [0], [1], [0, 0, 1, 1], [], []>} : vector<32x2xf32>, vector<2x288xf32>, vector<32x288xf32> -> vector<32x288xf32>
    %126 = arith.mulf %124, %125 : vector<32x288xf32>
    %c65 = arith.constant 65 : index
    %c0_52 = arith.constant 0 : index
    %127 = vector.load %arg3[%c65, %c0_52] : memref<168x288xf32, #tpu.memory_space<vmem>>, vector<32x288xf32>
    %cst_53 = arith.constant dense<0.000000e+00> : vector<32x32xf32>
    %128 = tpu.matmul %126, %127, %cst_53 {dimension_numbers = #tpu.dot_dimension_numbers<[1], [1], [0], [0], [0, 0, 1, 0], [], []>} : vector<32x288xf32>, vector<32x288xf32>, vector<32x32xf32> -> vector<32x32xf32>
    %c97 = arith.constant 97 : index
    %c0_54 = arith.constant 0 : index
    %129 = vector.load %arg3[%c97, %c0_54] : memref<168x288xf32, #tpu.memory_space<vmem>>, vector<32x288xf32>
    %130 = arith.mulf %117, %117 : vector<2x288xf32>
    %cst_55 = arith.constant dense<0.000000e+00> : vector<2x32xf32>
    %131 = tpu.matmul %130, %129, %cst_55 {dimension_numbers = #tpu.dot_dimension_numbers<[1], [1], [0], [0], [0, 0, 1, 0], [], []>} : vector<2x288xf32>, vector<32x288xf32>, vector<2x32xf32> -> vector<2x32xf32>
    %cst_56 = arith.constant 9.99999993E-9 : f32
    %132 = vector.broadcast %cst_56 : f32 to vector<2x32xf32>
    %133 = arith.addf %131, %132 : vector<2x32xf32>
    %134 = math.rsqrt %133 : vector<2x32xf32>
    %cst_57 = arith.constant dense<0.000000e+00> : vector<32x32xf32>
    %135 = tpu.matmul %123, %134, %cst_57 {dimension_numbers = #tpu.dot_dimension_numbers<[1], [0], [0], [1], [0, 0, 1, 1], [], []>} : vector<32x2xf32>, vector<2x32xf32>, vector<32x32xf32> -> vector<32x32xf32>
    %c545 = arith.constant 545 : index
    %c0_58 = arith.constant 0 : index
    %136 = vector.load %arg2[%c545, %c0_58] : memref<584x64xf32, #tpu.memory_space<vmem>>, vector<1x32xf32>
    %137 = arith.mulf %128, %135 : vector<32x32xf32>
    %138 = vector.broadcast %136 : vector<1x32xf32> to vector<32x32xf32>
    %139 = arith.addf %137, %138 : vector<32x32xf32>
    %cst_59 = arith.constant 2.000000e-01 : f32
    %140 = vector.broadcast %cst_59 : f32 to vector<32x32xf32>
    %141 = arith.mulf %140, %139 : vector<32x32xf32>
    %142 = arith.maximumf %139, %141 : vector<32x32xf32>
    %cst_60 = arith.constant 1.41421354 : f32
    %143 = vector.broadcast %cst_60 : f32 to vector<32x32xf32>
    %144 = arith.mulf %142, %143 : vector<32x32xf32>
    %cst_61 = arith.constant dense<0.000000e+00> : vector<32x32xf32>
    %145 = tpu.matmul %123, %122, %cst_61 {dimension_numbers = #tpu.dot_dimension_numbers<[1], [0], [0], [1], [0, 0, 1, 1], [], []>} : vector<32x2xf32>, vector<2x32xf32>, vector<32x32xf32> -> vector<32x32xf32>
    %146 = arith.mulf %144, %145 : vector<32x32xf32>
    %c546 = arith.constant 546 : index
    %c0_62 = arith.constant 0 : index
    %147 = vector.load %arg2[%c546, %c0_62] : memref<584x64xf32, #tpu.memory_space<vmem>>, vector<3x32xf32>
    %c549 = arith.constant 549 : index
    %c0_63 = arith.constant 0 : index
    %148 = vector.load %arg2[%c549, %c0_63] : memref<584x64xf32, #tpu.memory_space<vmem>>, vector<1x3xf32>
    %cst_64 = arith.constant dense<0.000000e+00> : vector<32x3xf32>
    %149 = tpu.matmul %146, %147, %cst_64 {dimension_numbers = #tpu.dot_dimension_numbers<[1], [1], [0], [0], [0, 0, 1, 0], [], []>} : vector<32x32xf32>, vector<3x32xf32>, vector<32x3xf32> -> vector<32x3xf32>
    %150 = vector.broadcast %148 : vector<1x3xf32> to vector<32x3xf32>
    %151 = arith.addf %149, %150 : vector<32x3xf32>
    %c0_65 = arith.constant 0 : index
    %c0_66 = arith.constant 0 : index
    %152 = vector.load %arg4[%c0_65, %c0_66] : memref<32x3xf32, #tpu.memory_space<vmem>>, vector<32x3xf32>
    tpu.vector_store %arg4[%c0_65, %c0_66], %151 {strides = array<i32>} : memref<32x3xf32, #tpu.memory_space<vmem>>, vector<32x3xf32>,
    return
  }
  func.func @transform_0(%arg0: i32) -> (i32, i32) {
    %c0_i32 = arith.constant 0 : i32
    %c0_i32_0 = arith.constant 0 : i32
    %c0_i32_1 = arith.constant 0 : i32
    return %c0_i32, %c0_i32_0 : i32, i32
  }
  func.func @transform_1(%arg0: i32) -> (i32, i32) {
    %c0_i32 = arith.constant 0 : i32
    %c0_i32_0 = arith.constant 0 : i32
    %c0_i32_1 = arith.constant 0 : i32
    return %c0_i32, %c0_i32_0 : i32, i32
  }
  func.func @transform_2(%arg0: i32) -> (i32, i32) {
    %c0_i32 = arith.constant 0 : i32
    %c0_i32_0 = arith.constant 0 : i32
    %c0_i32_1 = arith.constant 0 : i32
    return %c0_i32, %c0_i32_0 : i32, i32
  }
  func.func @transform_3(%arg0: i32) -> (i32, i32) {
    %c0_i32 = arith.constant 0 : i32
    %c0_i32_0 = arith.constant 0 : i32
    %c0_i32_1 = arith.constant 0 : i32
    return %c0_i32, %c0_i32_0 : i32, i32
  }
}

</mosaic_0001>

<bundles_post_ra>
// kernel: generator_forward.1
= control target key start
LH: loop header
LB: loop body
LE: loop exit
PB: predicated region body
PF: predicated region fallthrough
CT: control target
= control target key end

     0   :  { %vm20_vm0 = vcmask 130048   ;;  %vm59_vm1 = vcmask 523264   ;;  %vm672_vm2 = vcmask 1046528   ;;  %vm481_vm3 = vcmask 1041408   ;;  %s1870_s1 = inlined_call_operand.vmem [shape: f32[584,64], index: 1, kind: input, shape index: {}]   ;;  %s1871_s0 = inlined_call_operand.vmem [shape: f32[2,16], index: 0, kind: input, shape index: {}]   ;;  %s1872_s2 = inlined_call_operand.vmem [shape: f32[168,288], index: 2, kind: input, shape index: {}]   ;;  %s1873_s3 = inlined_call_operand.vmem [shape: f32[32,3], index: 3, kind: output, shape index: {}]  }
   0x1   :  { %v17_v0 = vld [vmem:[%s1870_s1 + $0x8] sm:$0xff]  ;;  %v16_v1 = vld [vmem:[%s1870_s1] sm:$0xff]  ;;  %v53_v6 = vld [vmem:[%s1870_s1 + $0x31] sm:$0xff]  ;;  %vm468_vm4 = vcmask 15360   ;;  %vm758_vm5 = vcmask 261120   ;;  %vm590_vm6 = vcmask 1040384  }
   0x2   :  { %38 = vmatpush.msra.mxu1 %v17_v0  ;;  %v14_v2 = vld [vmem:[%s1871_s0] sm:$0x3]  ;;  %v56_v3 = vld [vmem:[%s1870_s1 + $0x49] sm:$0xff]  ;;  %v49_v10 = vld [vmem:[%s1870_s1 + $0x11] sm:$0xff]  ;;  %vm1148_vm10 = vcmask 23552  }
   0x3   :  { %v55_v4 = vld [vmem:[%s1870_s1 + $0x41] sm:$0xff]  ;;  %v54_v5 = vld [vmem:[%s1870_s1 + $0x39] sm:$0xff]  ;;  %v52_v7 = vld [vmem:[%s1870_s1 + $0x29] sm:$0xff] }
   0x4   :  { %39 = vmatpush.msra.mxu1 %v16_v1  ;;  %v51_v8 = vld [vmem:[%s1870_s1 + $0x21] sm:$0xff]  ;;  %v50_v9 = vld [vmem:[%s1870_s1 + $0x19] sm:$0xff]  ;;  %v96_v11 = vld [vmem:[%s1870_s1 + $0x89] sm:$0xff] }
   0x5   :  { %1157 = vmatmul.msk.f32.vlgmr.msra.gmra.mxu1 %vm20_vm0, %v14_v2  ;;  %v95_v12 = vld [vmem:[%s1870_s1 + $0x81] sm:$0xff]  ;;  %110 = vmatpush.msra.mxu2 %v96_v11  ;;  %v94_v13 = vld [vmem:[%s1870_s1 + $0x79] sm:$0xff]  ;;  %v1213_v14 = vld [vmem:[%s1870_s1 + $0x10] ss:$0 sm:$0xff] }
   0x6   :  { %71 = vmatpush.msrb.mxu1 %v56_v3  ;;  %v93_v20 = vld [vmem:[%s1870_s1 + $0x71] sm:$0xff]  ;;  %v92_v21 = vld [vmem:[%s1870_s1 + $0x69] sm:$0xff]  ;;  %v91_v22 = vld [vmem:[%s1870_s1 + $0x61] sm:$0xff] }
   0x7   :  { %111 = vmatpush.msra.mxu2 %v95_v12  ;;  %v90_v23 = vld [vmem:[%s1870_s1 + $0x59] sm:$0xff]  ;;  %v89_v24 = vld [vmem:[%s1870_s1 + $0x51] sm:$0xff]  ;;  %v135_v25 = vld [vmem:[%s1870_s1 + $0xc9] sm:$0xff] }
   0x8   :  { %72 = vmatpush.msrb.mxu1 %v55_v4  ;;  %v134_v26 = vld [vmem:[%s1870_s1 + $0xc1] sm:$0xff]  ;;  %149 = vmatpush.msra.mxu3 %v135_v25  ;;  %v133_v27 = vld [vmem:[%s1870_s1 + $0xb9] sm:$0xff]  ;;  %v1214_v28 = vld [vmem:[%s1870_s1 + $0x1d1] ss:$0 sm:$0xff] }
   0x9   :  { %112 = vmatpush.msra.mxu2 %v94_v13  ;;  %v1322_v31 = vld [vmem:[%s1870_s1 + $0x1d8] sm:$0xff]  ;;  %v131_v41 = vld [vmem:[%s1870_s1 + $0xa9] sm:$0xff]  ;;  %v130_v42 = vld [vmem:[%s1870_s1 + $0xa1] sm:$0xff] }
   0xa   :  { %73 = vmatpush.msrb.mxu1 %v54_v5  ;;  %150 = vmatpush.msra.mxu3 %v134_v26  ;;  %v47_v33 = vperm.slane %v1322_v31, 0  ;;  %v86_v35 = vperm.slane %v1322_v31, 1  ;;  %v132_v40 = vld [vmem:[%s1870_s1 + $0xb1] sm:$0xff]  ;;  %v129_v43 = vld [vmem:[%s1870_s1 + $0x99] sm:$0xff]  ;;  %v174_v45 = vld [vmem:[%s1870_s1 + $0x109] sm:$0xff]  ;;  %v125_v53 = vperm.slane %v1322_v31, 2 }
   0xb   :  { %113 = vmatpush.msra.mxu2 %v93_v20  ;;  %v128_v44 = vld [vmem:[%s1870_s1 + $0x91] sm:$0xff]  ;;  %v173_v46 = vld [vmem:[%s1870_s1 + $0x101] sm:$0xff]  ;;  %188 = vmatpush.msra.mxu0 %v174_v45  ;;  %v172_v47 = vld [vmem:[%s1870_s1 + $0xf9] sm:$0xff] }
   0xc   :  { %74 = vmatpush.msrb.mxu1 %v53_v6  ;;  %151 = vmatpush.msra.mxu3 %v133_v27  ;;  %v1215_v48 = vld [vmem:[%s1870_s1 + $0x1d2] ss:$0 sm:$0xff]  ;;  %v170_v58 = vld [vmem:[%s1870_s1 + $0xe9] sm:$0xff]  ;;  %v169_v59 = vld [vmem:[%s1870_s1 + $0xe1] sm:$0xff]  ;;  %v164_v6 = vperm.slane %v1322_v31, 3 }
   0xd   :  { %114 = vmatpush.msra.mxu2 %v92_v21  ;;  %189 = vmatpush.msra.mxu0 %v173_v46  ;;  %v171_v57 = vld [vmem:[%s1870_s1 + $0xf1] sm:$0xff]  ;;  %v168_v60 = vld [vmem:[%s1870_s1 + $0xd9] sm:$0xff]  ;;  %v213_v62 = vld [vmem:[%s1870_s1 + $0x149] sm:$0xff] }
   0xe   :  { %75 = vmatpush.msrb.mxu1 %v52_v7  ;;  %152 = vmatpush.msra.mxu3 %v132_v40  ;;  %v167_v61 = vld [vmem:[%s1870_s1 + $0xd1] sm:$0xff]  ;;  %v212_v63 = vld [vmem:[%s1870_s1 + $0x141] sm:$0xff]  ;;  %v211_v0 = vld [vmem:[%s1870_s1 + $0x139] sm:$0xff] }
   0xf   :  { %115 = vmatpush.msra.mxu2 %v91_v22  ;;  %190 = vmatpush.msra.mxu0 %v172_v47  ;;  %v1216_v1 = vld [vmem:[%s1870_s1 + $0x1d3] ss:$0 sm:$0xff]  ;;  %v209_v11 = vld [vmem:[%s1870_s1 + $0x129] sm:$0xff]  ;;  %v208_v12 = vld [vmem:[%s1870_s1 + $0x121] sm:$0xff] }
  0x10   :  { %76 = vmatpush.msrb.mxu1 %v51_v8  ;;  %153 = vmatpush.msra.mxu3 %v131_v41  ;;  %v207_v13 = vld [vmem:[%s1870_s1 + $0x119] sm:$0xff]  ;;  %v249_v27 = vld [vmem:[%s1870_s1 + $0x171] sm:$0xff]  ;;  %v242_v41 = vperm.slane %v1322_v31, 5  ;;  %v287_v46 = vld [vmem:[%s1870_s1 + $0x1a9] sm:$0xff] }
  0x11   :  { %116 = vmatpush.msra.mxu2 %v90_v23  ;;  %191 = vmatpush.msra.mxu0 %v171_v57  ;;  %v203_v23 = vperm.slane %v1322_v31, 4  ;;  %v288_v45 = vld [vmem:[%s1870_s1 + $0x1b1] sm:$0xff]  ;;  %v286_v47 = vld [vmem:[%s1870_s1 + $0x1a1] sm:$0xff] }
  0x12   :  { %77 = vmatpush.msrb.mxu1 %v50_v9  ;;  %154 = vmatpush.msra.mxu3 %v130_v42 }
  0x13   :  { %117 = vmatpush.msra.mxu2 %v89_v24  ;;  %192 = vmatpush.msra.mxu0 %v170_v58 }
  0x14   :  { %78 = vmatpush.msrb.mxu1 %v49_v10  ;;  %155 = vmatpush.msra.mxu3 %v129_v43  ;;  %v210_v10 = vld [vmem:[%s1870_s1 + $0x131] sm:$0xff] }
  0x15   :  { %193 = vmatpush.msra.mxu0 %v169_v59  ;;  %v281_v59 = vperm.slane %v1322_v31, 6 }
  0x16   :  { %156 = vmatpush.msra.mxu3 %v128_v44  ;;  %227 = vmatpush.msra.mxu1 %v213_v62 }
  0x17   :  { %194 = vmatpush.msra.mxu0 %v168_v60 }
  0x18   :  { %228 = vmatpush.msra.mxu1 %v212_v63  ;;  %v341_v63 = vld [vmem:[%s1872_s2 + $0x90] sm:$0xff] }
  0x19   :  { %195 = vmatpush.msra.mxu0 %v167_v61 }
  0x1a   :  { %229 = vmatpush.msra.mxu1 %v211_v0  ;;  %v342_v0 = vld [vmem:[%s1872_s2 + $0x98] sm:$0xff] }
  0x1c   :  { %230 = vmatpush.msra.mxu1 %v210_v10  ;;  %v423_v10 = vld [vmem:[%s1870_s1 + $0x200] sm:$0xff] }
  0x1e   :  { %231 = vmatpush.msra.mxu1 %v209_v11  ;;  %v332_v11 = vld [vmem:[%s1872_s2 + $0x48] sm:$0xff] }
  0x20   :  { %232 = vmatpush.msra.mxu1 %v208_v12  ;;  %v333_v12 = vld [vmem:[%s1872_s2 + $0x50] sm:$0xff] }
  0x22   :  { %233 = vmatpush.msra.mxu1 %v207_v13  ;;  %v334_v13 = vld [vmem:[%s1872_s2 + $0x58] sm:$0xff] }
  0x82   :  { %v41_v15 = vpop.f32.mrf.mxu1 }
  0x83   :  { %v42_v16 = vadd.f32 %v1213_v14, %v41_v15  ;;  %v206_v14 = vld [vmem:[%s1870_s1 + $0x111] sm:$0xff]  ;;  %v252_v15 = vld [vmem:[%s1870_s1 + $0x189] sm:$0xff] }
  0x84   :  { %234 = vmatpush.msra.mxu1 %v206_v14  ;;  %266 = vmatpush.msrb.mxu2 %v252_v15  ;;  %v422_v14 = vld [vmem:[%s1870_s1 + $0x1f8] sm:$0xff]  ;;  %v329_v15 = vld [vmem:[%s1872_s2 + $0x30] sm:$0xff] }
  0x85   :  { %v44_v17 = vmul.f32 0.2, %v42_v16 }
  0x87   :  { %v45_v18 = vmax.f32 %v42_v16, %v44_v17  ;;  %v251_v16 = vld [vmem:[%s1870_s1 + $0x181] sm:$0xff]  ;;  %v250_v17 = vld [vmem:[%s1870_s1 + $0x179] sm:$0xff] }
  0x88   :  { %267 = vmatpush.msrb.mxu2 %v251_v16  ;;  %v330_v16 = vld [vmem:[%s1872_s2 + $0x38] sm:$0xff] }
  0x89   :  { %v46_v19 = vmul.f32 1.4142135, %v45_v18  ;;  %v1217_v18 = vld [vmem:[%s1870_s1 + $0x1d4] ss:$0 sm:$0xff] }
  0x8a   :  { %268 = vmatpush.msrb.mxu2 %v250_v17  ;;  %v331_v17 = vld [vmem:[%s1872_s2 + $0x40] sm:$0xff] }
  0x8b   :  { %1158 = vmatmul.msk.f32.vlgmr.msrb.gmra.mxu1 %vm59_vm1, %v46_v19  ;;  %v48_v37 = vmul.f32 %v47_v33, %v46_v19  ;;  %v291_v33 = vld [vmem:[%s1870_s1 + $0x1c9] sm:$0xff] }
  0x8c   :  { %269 = vmatpush.msrb.mxu2 %v249_v27  ;;  %305 = vmatpush.msrb.mxu3 %v291_v33  ;;  %v1220_v27 = vld [vmem:[%s1870_s1 + $0x1d7] ss:$0 sm:$0xff]  ;;  %v320_v33 = vperm.slane %v1322_v31, 7 }
  0x8d   :  { %v652_v31 = vld [vmem:[%s1872_s2 + $0x110] sm:$0xff] }
 0x108   :  { %v80_v29 = vpop.f32.mrf.mxu1 }
 0x109   :  { %v81_v30 = vadd.f32 %v1214_v28, %v80_v29  ;;  %v248_v28 = vld [vmem:[%s1870_s1 + $0x169] sm:$0xff]  ;;  %v247_v29 = vld [vmem:[%s1870_s1 + $0x161] sm:$0xff] }
 0x10a   :  { %270 = vmatpush.msrb.mxu2 %v248_v28 }
 0x10b   :  { %v83_v32 = vmul.f32 0.2, %v81_v30 }
 0x10c   :  { %271 = vmatpush.msrb.mxu2 %v247_v29 }
 0x10d   :  { %v84_v34 = vmax.f32 %v81_v30, %v83_v32  ;;  %v246_v30 = vld [vmem:[%s1870_s1 + $0x159] sm:$0xff]  ;;  %v245_v32 = vld [vmem:[%s1870_s1 + $0x151] sm:$0xff] }
 0x10e   :  { %272 = vmatpush.msrb.mxu2 %v246_v30 }
 0x10f   :  { %v85_v36 = vmul.f32 1.4142135, %v84_v34  ;;  %v290_v34 = vld [vmem:[%s1870_s1 + $0x1c1] sm:$0xff] }
 0x110   :  { %273 = vmatpush.msrb.mxu2 %v245_v32  ;;  %306 = vmatpush.msrb.mxu3 %v290_v34 }
 0x111   :  { %v87_v38 = vmul.f32 %v86_v35, %v85_v36  ;;  %1159 = vmatmul.msk.f32.vlgmr.msra.gmra.mxu2 %vm59_vm1, %v85_v36  ;;  %v289_v35 = vld [vmem:[%s1870_s1 + $0x1b9] sm:$0xff]  ;;  %v1218_v36 = vld [vmem:[%s1870_s1 + $0x1d5] ss:$0 sm:$0xff] }
 0x112   :  { %307 = vmatpush.msrb.mxu3 %v289_v35 }
 0x113   :  { %v88_v39 = vadd.f32 %v87_v38, %v48_v37 }
 0x114   :  { %308 = vmatpush.msrb.mxu3 %v288_v45 }
 0x116   :  { %309 = vmatpush.msrb.mxu3 %v287_v46 }
 0x118   :  { %310 = vmatpush.msrb.mxu3 %v286_v47 }
 0x194   :  { %v119_v49 = vpop.f32.mrf.mxu2 }
 0x195   :  { %v120_v50 = vadd.f32 %v1215_v48, %v119_v49  ;;  %v285_v48 = vld [vmem:[%s1870_s1 + $0x199] sm:$0xff]  ;;  %v284_v49 = vld [vmem:[%s1870_s1 + $0x191] sm:$0xff] }
 0x196   :  { %311 = vmatpush.msrb.mxu3 %v285_v48  ;;  %v1589_v48 = vld [vmem:[%s1870_s1 + $0x226] sm:$0xff] }
 0x197   :  { %v122_v51 = vmul.f32 0.2, %v120_v50 }
 0x198   :  { %312 = vmatpush.msrb.mxu3 %v284_v49 }
 0x199   :  { %v123_v52 = vmax.f32 %v120_v50, %v122_v51  ;;  %v344_v50 = vld [vmem:[%s1872_s2 + $0xa8] sm:$0xff]  ;;  %v345_v51 = vld [vmem:[%s1872_s2 + $0xb0] sm:$0xff] }
 0x19a   :  { %367 = vmatpush.msrb.mxu0 %v344_v50  ;;  %387 = vmatpush.msrb.mxu1 %v345_v51  ;;  %v646_v51 = vld [vmem:[%s1872_s2 + $0xe0] sm:$0xff] }
 0x19b   :  { %v124_v54 = vmul.f32 1.4142135, %v123_v52  ;;  %v346_v52 = vld [vmem:[%s1872_s2 + $0xb8] sm:$0xff] }
 0x19c   :  { %407 = vmatpush.msra.mxu2 %v346_v52  ;;  %368 = vmatpush.msrb.mxu0 %v341_v63  ;;  %v873_v52 = vld [vmem:[%s1872_s2 + $0x178] sm:$0xff]  ;;  %v1619_v63 = vld [vmem:[%s1870_s1 + $0x22e] sm:$0xff] }
 0x19d   :  { %v126_v55 = vmul.f32 %v125_v53, %v124_v54  ;;  %1160 = vmatmul.msk.f32.vlgmr.msra.gmra.mxu3 %vm59_vm1, %v124_v54  ;;  %v426_v53 = vld [vmem:[%s1870_s1 + $0x218] sm:$0xff]  ;;  %v1219_v54 = vld [vmem:[%s1870_s1 + $0x1d6] ss:$0 sm:$0xff]  ;;  %388 = vmatpush.msrb.mxu1 %v342_v0 }
 0x19e   :  { %437 = vmatpush.msra.mxu3 %v426_v53  ;;  %v876_v53 = vld [vmem:[%s1872_s2 + $0x190] sm:$0x1] }
 0x19f   :  { %v127_v56 = vadd.f32 %v126_v55, %v88_v39 }
 0x220   :  { %v158_v2 = vpop.f32.mrf.mxu3 }
 0x221   :  { %v159_v3 = vadd.f32 %v1216_v1, %v158_v2  ;;  %v343_v1 = vld [vmem:[%s1872_s2 + $0xa0] sm:$0xff]  ;;  %v425_v2 = vld [vmem:[%s1870_s1 + $0x210] sm:$0xff] }
 0x222   :  { %408 = vmatpush.msra.mxu2 %v343_v1  ;;  %438 = vmatpush.msra.mxu3 %v425_v2 }
 0x223   :  { %v161_v4 = vmul.f32 0.2, %v159_v3 }
 0x225   :  { %v162_v5 = vmax.f32 %v159_v3, %v161_v4  ;;  %v338_v3 = vld [vmem:[%s1872_s2 + $0x78] sm:$0xff]  ;;  %v339_v4 = vld [vmem:[%s1872_s2 + $0x80] sm:$0xff] }
 0x226   :  { %369 = vmatpush.msrb.mxu0 %v338_v3  ;;  %389 = vmatpush.msrb.mxu1 %v339_v4  ;;  %v867_v4 = vld [vmem:[%s1872_s2 + $0x148] sm:$0xff] }
 0x227   :  { %v163_v7 = vmul.f32 1.4142135, %v162_v5  ;;  %v340_v5 = vld [vmem:[%s1872_s2 + $0x88] sm:$0xff] }
 0x228   :  { %409 = vmatpush.msra.mxu2 %v340_v5  ;;  %v1221_v5 = vld [vmem:[%s1870_s1 + $0x220] ss:$0 sm:$0xff] }
 0x229   :  { %v165_v8 = vmul.f32 %v164_v6, %v163_v7  ;;  %1161 = vmatmul.msk.f32.vlgmr.msra.gmra.mxu0 %vm59_vm1, %v163_v7  ;;  %v424_v6 = vld [vmem:[%s1870_s1 + $0x208] sm:$0xff]  ;;  %v335_v7 = vld [vmem:[%s1872_s2 + $0x60] sm:$0xff] }
 0x22a   :  { %439 = vmatpush.msra.mxu3 %v424_v6  ;;  %370 = vmatpush.msrb.mxu0 %v335_v7 }
 0x22b   :  { %v166_v9 = vadd.f32 %v165_v8, %v127_v56  ;;  %v336_v8 = vld [vmem:[%s1872_s2 + $0x68] sm:$0xff] }
 0x22c   :  { %390 = vmatpush.msrb.mxu1 %v336_v8  ;;  %440 = vmatpush.msra.mxu3 %v423_v10  ;;  %v864_v10 = vld [vmem:[%s1872_s2 + $0x130] sm:$0xfe] }
 0x22d   :  { %371 = vmatpush.msrb.mxu0 %v332_v11 }
 0x22e   :  { %391 = vmatpush.msrb.mxu1 %v333_v12  ;;  %441 = vmatpush.msra.mxu3 %v422_v14  ;;  %v1645_v12 = vld [vmem:[%s1870_s1 + $0x236] sm:$0xff]  ;;  %v901_v14 = vrot.slane %v864_v10, 1 }
 0x22f   :  { %372 = vmatpush.msrb.mxu0 %v329_v15 }
 0x230   :  { %392 = vmatpush.msrb.mxu1 %v330_v16  ;;  %v1661_v16 = vld [vmem:[%s1870_s1 + $0x23e] sm:$0xff] }
 0x2a6   :  { %v197_v19 = vpop.f32.mrf.mxu0 }
 0x2a7   :  { %v198_v20 = vadd.f32 %v1217_v18, %v197_v19  ;;  %v421_v18 = vld [vmem:[%s1870_s1 + $0x1f0] sm:$0xff]  ;;  %v326_v19 = vld [vmem:[%s1872_s2 + $0x18] sm:$0xff] }
 0x2a8   :  { %442 = vmatpush.msra.mxu3 %v421_v18  ;;  %373 = vmatpush.msrb.mxu0 %v326_v19  ;;  %v651_v18 = vld [vmem:[%s1872_s2 + $0x108] sm:$0xff]  ;;  %v654_v19 = vld [vmem:[%s1872_s2 + $0x120] sm:$0x1] }
 0x2a9   :  { %v200_v21 = vmul.f32 0.2, %v198_v20 }
 0x2ab   :  { %v201_v22 = vmax.f32 %v198_v20, %v200_v21  ;;  %v327_v20 = vld [vmem:[%s1872_s2 + $0x20] sm:$0xff]  ;;  %v328_v21 = vld [vmem:[%s1872_s2 + $0x28] sm:$0xff] }
 0x2ac   :  { %393 = vmatpush.msrb.mxu1 %v327_v20  ;;  %v738_v20 = vrot.slane %v651_v18, 1 }
 0x2ad   :  { %v202_v24 = vmul.f32 1.4142135, %v201_v22  ;;  %v420_v22 = vld [vmem:[%s1870_s1 + $0x1e8] sm:$0xff] }
 0x2ae   :  { %443 = vmatpush.msra.mxu3 %v420_v22 }
 0x2af   :  { %v204_v25 = vmul.f32 %v203_v23, %v202_v24  ;;  %1162 = vmatmul.msk.f32.vlgmr.msra.gmra.mxu1 %vm59_vm1, %v202_v24  ;;  %v323_v23 = vld [vmem:[%s1872_s2] sm:$0xff]  ;;  %v324_v24 = vld [vmem:[%s1872_s2 + $0x8] sm:$0xff] }
 0x2b0   :  { %374 = vmatpush.msrb.mxu0 %v323_v23  ;;  %394 = vmatpush.msrb.mxu1 %v324_v24  ;;  %v648_v23 = vld [vmem:[%s1872_s2 + $0xf0] sm:$0xff] }
 0x2b1   :  { %v205_v26 = vadd.f32 %v204_v25, %v166_v9  ;;  %v337_v9 = vld [vmem:[%s1872_s2 + $0x70] sm:$0xff]  ;;  %v732_v24 = vrot.slane %v648_v23, 1 }
 0x2b2   :  { %410 = vmatpush.msra.mxu2 %v337_v9  ;;  %v325_v25 = vld [vmem:[%s1872_s2 + $0x10] sm:$0xff]  ;;  %v902_v9 = vrot.slane %v867_v4, 1 }
 0x2b4   :  { %411 = vmatpush.msra.mxu2 %v334_v13  ;;  %v903_v15 = vsel %vm672_vm2, %v901_v14, %v902_v9  ;;  %v874_v14 = vld [vmem:[%s1872_s2 + $0x180] sm:$0x1] }
 0x2b6   :  { %412 = vmatpush.msra.mxu2 %v331_v17 }
 0x2b8   :  { %413 = vmatpush.msra.mxu2 %v328_v21  ;;  %v744_v21 = vrot.slane %v654_v19, 1 }
 0x2ba   :  { %414 = vmatpush.msra.mxu2 %v325_v25  ;;  %v745_v22 = vsel %vm672_vm2, %v738_v20, %v744_v21  ;;  %v653_v25 = vld [vmem:[%s1872_s2 + $0x118] sm:$0xff]  ;;  %v916_v21 = vrot.slane %v874_v14, 1 }
 0x32c   :  { %v236_v37 = vpop.f32.mrf.mxu1 }
 0x32d   :  { %v237_v38 = vadd.f32 %v1218_v36, %v236_v37  ;;  %v1165_v37 = vld [vmem:[%s1872_s2 + $0xc0] ss:$8 sm:$0x7] }
 0x32f   :  { %v239_v39 = vmul.f32 0.2, %v237_v38 }
 0x331   :  { %v240_v40 = vmax.f32 %v237_v38, %v239_v39  ;;  %v655_v38 = vld [vmem:[%s1872_s2 + $0x128] sm:$0x1]  ;;  %v350_v39 = vperm.slane %v1165_v37, 0 }
 0x333   :  { %v241_v42 = vmul.f32 1.4142135, %v240_v40  ;;  %v351_v40 = vperm.slane %v1165_v37, 1 }
 0x335   :  { %v243_v43 = vmul.f32 %v242_v41, %v241_v42  ;;  %1163 = vmatmul.msk.f32.vlgmr.msrb.gmra.mxu2 %vm59_vm1, %v241_v42  ;;  %v740_v41 = vrot.slane %v652_v31, 1  ;;  %v746_v42 = vrot.slane %v655_v38, 1  ;;  %v650_v31 = vld [vmem:[%s1872_s2 + $0x100] sm:$0xff] }
 0x336   :  { %v736_v38 = vrot.slane %v650_v31, 1 }
 0x337   :  { %v244_v44 = vadd.f32 %v243_v43, %v205_v26  ;;  %v419_v26 = vld [vmem:[%s1870_s1 + $0x1e0] sm:$0xff]  ;;  %v649_v43 = vld [vmem:[%s1872_s2 + $0xf8] sm:$0xff]  ;;  %v747_v49 = vsel %vm672_vm2, %v740_v41, %v746_v42 }
 0x338   :  { %444 = vmatpush.msra.mxu3 %v419_v26  ;;  %v734_v50 = vrot.slane %v649_v43, 1  ;;  %v656_v26 = vld [vmem:[%s1872_s2 + $0x130] sm:$0x1]  ;;  %v644_v43 = vld [vmem:[%s1872_s2 + $0xd0] sm:$0xfe] }
 0x3b8   :  { %v275_v55 = vpop.f32.mrf.mxu2 }
 0x3b9   :  { %v276_v56 = vadd.f32 %v1219_v54, %v275_v55  ;;  %v352_v54 = vperm.slane %v1165_v37, 2  ;;  %v727_v55 = vrot.slane %v646_v51, 1 }
 0x3bb   :  { %v278_v57 = vmul.f32 0.2, %v276_v56  ;;  %v735_v0 = vsel %vm672_vm2, %v727_v55, %v734_v50 }
 0x3bd   :  { %v279_v58 = vmax.f32 %v276_v56, %v278_v57  ;;  %v741_v56 = vsel %vm672_vm2, %v734_v50, %v740_v41  ;;  %v914_v57 = vrot.slane %v873_v52, 1  ;;  %v875_v50 = vld [vmem:[%s1872_s2 + $0x188] sm:$0x1] }
 0x3bf   :  { %v280_v60 = vmul.f32 1.4142135, %v279_v58  ;;  %v920_v58 = vrot.slane %v876_v53, 1 }
 0x3c1   :  { %v282_v61 = vmul.f32 %v281_v59, %v280_v60  ;;  %1164 = vmatmul.msk.f32.vlgmr.msrb.gmra.mxu3 %vm59_vm1, %v280_v60  ;;  %v643_v60 = vld [vmem:[%s1872_s2 + $0xc8] sm:$0xfe]  ;;  %v921_v2 = vsel %vm672_vm2, %v914_v57, %v920_v58  ;;  %v453_v58 = vld [vmem:[%s1872_s2 + $0x180] sm:$0xfe] }
 0x3c2   :  { %v726_v1 = vrot.slane %v643_v60, 1  ;;  %787 = vmatpush.xpose.msrb.mxu3 %v745_v22  ;;  %v869_v60 = vld [vmem:[%s1872_s2 + $0x158] sm:$0xff]  ;;  %v863_v22 = vld [vmem:[%s1872_s2 + $0x128] sm:$0xfe] }
 0x3c3   :  { %v1475_v62 = vadd.f32 %v282_v61, %v244_v44  ;;  %v870_v61 = vld [vmem:[%s1872_s2 + $0x160] sm:$0xff] }
 0x3c4   :  { %v908_v3 = vrot.slane %v870_v61, 1  ;;  %v728_v7 = vsel %vm672_vm2, %v726_v1, %v727_v55  ;;  %v906_v61 = vrot.slane %v869_v60, 1 }
 0x3c6   :  { %v915_v8 = vsel %vm672_vm2, %v908_v3, %v914_v57  ;;  %v909_v13 = vsel %vm672_vm2, %v902_v9, %v908_v3 }
 0x444   :  { %v314_v28 = vpop.f32.mrf.mxu3 }
 0x445   :  { %v315_v29 = vadd.f32 %v1220_v27, %v314_v28  ;;  %v742_v27 = vrot.slane %v653_v25, 1  ;;  %v748_v28 = vrot.slane %v656_v26, 1  ;;  %v898_v26 = vrot.slane %v863_v22, 1 }
 0x447   :  { %v317_v30 = vmul.f32 0.2, %v315_v29 }
 0x449   :  { %v318_v32 = vmax.f32 %v315_v29, %v317_v30  ;;  %v739_v29 = vsel %vm672_vm2, %v732_v24, %v738_v20  ;;  %v645_v30 = vld [vmem:[%s1872_s2 + $0xd8] sm:$0xff] }
 0x44a   :  { %788 = vmatpush.xpose.msrb.mxu3 %v739_v29 }
 0x44b   :  { %v319_v34 = vmul.f32 1.4142135, %v318_v32  ;;  %v749_v32 = vsel %vm672_vm2, %v742_v27, %v748_v28 }
 0x44d   :  { %v321_v35 = vmul.f32 %v320_v33, %v319_v34  ;;  %v724_v33 = vrot.slane %v645_v30, 1 }
 0x44f   :  { %v322_v36 = vadd.f32 %v321_v35, %v1475_v62  ;;  %v733_v34 = vsel %vm672_vm2, %v724_v33, %v732_v24  ;;  %v642_v35 = vld [vmem:[%s1872_s2 + $0xc0] sm:$0xfe] }
 0x450   :  { %789 = vmatpush.xpose.msrb.mxu3 %v733_v34 }
 0x451   :  { %1166 = vmatmul.msk.f32.vlgmr.msrb.gmra.mxu0 %vm59_vm1, %v322_v36  ;;  %1167 = vmatmul.msk.f32.vlgmr.msrb.gmra.mxu1 %vm59_vm1, %v322_v36 }
 0x452   :  { %1168 = vmatmul.msk.f32.vlgmr.msra.gmra.mxu2 %vm59_vm1, %v322_v36  ;;  %1169 = vmatmul.msk.f32.vlgmr.msra.gmra.mxu3 %vm59_vm1, %v322_v36  ;;  %v723_v36 = vrot.slane %v642_v35, 1 }
 0x454   :  { %v725_v37 = vsel %vm672_vm2, %v723_v36, %v724_v33 }
 0x455   :  { %790 = vmatpush.xpose.msrb.mxu3 %v725_v37 }
 0x4ce   :  { %v376_v44 = vpop.f32.mrf.mxu0  ;;  %v396_v45 = vpop.f32.mrf.mxu1 }
 0x4cf   :  { %v1582_v46 = vadd.f32 %v376_v44, %v350_v39  ;;  %v1584_v47 = vadd.f32 %v396_v45, %v351_v40  ;;  %v743_v39 = vsel %vm672_vm2, %v736_v38, %v742_v27  ;;  %v647_v40 = vld [vmem:[%s1872_s2 + $0xe8] sm:$0xff]  ;;  %v729_v44 = vrot.slane %v644_v43, 1 }
 0x4d0   :  { %v730_v41 = vrot.slane %v647_v40, 1  ;;  %v460_v40 = vld [vmem:[%s1872_s2 + $0x1b8] sm:$0xff] }
 0x4d1   :  { %1170 = vmatpush.msk.msra.mxu0 %vm481_vm3, %v1582_v46  ;;  %1175 = vmatpush.msk.msra.mxu1 %vm481_vm3, %v1584_v47 }
 0x4d2   :  { %1171 = vmatmul.msk.f32.vlgmr.msra.gmra.mxu0 %vm468_vm4, %v1589_v48  ;;  %1176 = vmatmul.msk.f32.vlgmr.msra.gmra.mxu1 %vm468_vm4, %v1589_v48  ;;  %v737_v42 = vsel %vm672_vm2, %v730_v41, %v736_v38  ;;  %v731_v45 = vsel %vm672_vm2, %v729_v44, %v730_v41  ;;  %v865_v41 = vld [vmem:[%s1872_s2 + $0x138] sm:$0xff] }
 0x4d3   :  { %816 = vmatpush.xpose.msrb.mxu0 %v747_v49  ;;  %1185 = vmatpush.xpose.msk.msrb.mxu1 %vm758_vm5, %v749_v32  ;;  %v872_v49 = vld [vmem:[%s1872_s2 + $0x170] sm:$0xff] }
 0x4d4   :  { %v912_v53 = vrot.slane %v872_v49, 1  ;;  %v455_v49 = vld [vmem:[%s1872_s2 + $0x190] sm:$0xfe] }
 0x4d5   :  { %v416_v59 = vpop.f32.mrf.mxu2  ;;  %v446_v6 = vpop.f32.mrf.mxu3 }
 0x4d6   :  { %v417_v62 = vadd.f32 %v416_v59, %v352_v54  ;;  %v447_v11 = vadd.f32 %v1221_v5, %v446_v6  ;;  %v918_v54 = vrot.slane %v875_v50, 1  ;;  %v454_v59 = vld [vmem:[%s1872_s2 + $0x188] sm:$0xfe]  ;;  %v913_v1 = vsel %vm672_vm2, %v906_v61, %v912_v53  ;;  %v456_v6 = vld [vmem:[%s1872_s2 + $0x198] sm:$0xff] }
 0x4d7   :  { %817 = vmatpush.xpose.msrb.mxu0 %v741_v56  ;;  %1186 = vmatpush.xpose.msk.msrb.mxu1 %vm758_vm5, %v743_v39  ;;  %v459_v39 = vld [vmem:[%s1872_s2 + $0x1b0] sm:$0xff] }
 0x4d8   :  { %1180 = vmatpush.msk.msrb.mxu2 %vm481_vm3, %v417_v62  ;;  %v879_v17 = vmul.f32 %v417_v62, %v417_v62  ;;  %v919_v57 = vsel %vm672_vm2, %v912_v53, %v918_v54  ;;  %v458_v54 = vld [vmem:[%s1872_s2 + $0x1a8] sm:$0xff] }
 0x4d9   :  { %1181 = vmatmul.msk.f32.vlgmr.msrb.gmra.mxu2 %vm468_vm4, %v1589_v48  ;;  %973 = vmatpush.xpose.msra.mxu3 %v919_v57 }
 0x4da   :  { %1172 = vmatmul.msk.f32.gmra.mxu0 %vm468_vm4, %v1619_v63  ;;  %1177 = vmatmul.msk.f32.gmra.mxu1 %vm468_vm4, %v1619_v63 }
 0x4db   :  { %818 = vmatpush.xpose.msrb.mxu0 %v735_v0  ;;  %1193 = vmatpush.xpose.msk.msra.mxu2 %vm758_vm5, %v921_v2  ;;  %v866_v2 = vld [vmem:[%s1872_s2 + $0x140] sm:$0xff] }
 0x4dc   :  { %1187 = vmatpush.xpose.msk.msrb.mxu1 %vm758_vm5, %v737_v42  ;;  %v899_v5 = vrot.slane %v866_v2, 1  ;;  %v896_v42 = vrot.slane %v865_v41, 1 }
 0x4dd   :  { %974 = vmatpush.xpose.msra.mxu3 %v913_v1 }
 0x4de   :  { %v900_v33 = vsel %vm672_vm2, %v898_v26, %v899_v5 }
 0x4df   :  { %819 = vmatpush.xpose.msrb.mxu0 %v728_v7  ;;  %1194 = vmatpush.xpose.msk.msra.mxu2 %vm758_vm5, %v915_v8  ;;  %v457_v8 = vld [vmem:[%s1872_s2 + $0x1a0] sm:$0xff] }
 0x4e0   :  { %1188 = vmatpush.xpose.msk.msrb.mxu1 %vm758_vm5, %v731_v45 }
 0x4e1   :  { %1182 = vmatmul.msk.f32.gmra.mxu2 %vm468_vm4, %v1619_v63 }
 0x4e2   :  { %1173 = vmatmul.msk.f32.gmra.mxu0 %vm468_vm4, %v1645_v12  ;;  %1178 = vmatmul.msk.f32.gmra.mxu1 %vm468_vm4, %v1645_v12 }
 0x4e3   :  { %1203 = vmatpush.msk.msra.mxu0 %vm481_vm3, %v447_v11  ;;  %1195 = vmatpush.xpose.msk.msra.mxu2 %vm758_vm5, %v909_v13  ;;  %v871_v13 = vld [vmem:[%s1872_s2 + $0x168] sm:$0xff] }
 0x4e4   :  { %v910_v20 = vrot.slane %v871_v13, 1  ;;  %v466_v13 = vld [vmem:[%s1872_s2 + $0x1e8] sm:$0x1] }
 0x4e6   :  { %v917_v28 = vsel %vm672_vm2, %v910_v20, %v916_v21  ;;  %v461_v21 = vld [vmem:[%s1872_s2 + $0x1c0] sm:$0xff] }
 0x4e7   :  { %1196 = vmatpush.xpose.msk.msra.mxu2 %vm758_vm5, %v903_v15  ;;  %v907_v15 = vsel %vm672_vm2, %v899_v5, %v906_v61  ;;  %953 = vmatpush.xpose.msra.mxu1 %v917_v28 }
 0x4e8   :  { %975 = vmatpush.xpose.msra.mxu3 %v907_v15 }
 0x4e9   :  { %1183 = vmatmul.msk.f32.gmra.mxu2 %vm468_vm4, %v1645_v12 }
 0x4ea   :  { %1174 = vmatmul.msk.f32.gmra.mxu0 %vm468_vm4, %v1661_v16  ;;  %1179 = vmatmul.msk.f32.gmra.mxu1 %vm468_vm4, %v1661_v16 }
 0x4ec   :  { %976 = vmatpush.xpose.msra.mxu3 %v900_v33 }
 0x4f1   :  { %1184 = vmatmul.msk.f32.gmra.mxu2 %vm468_vm4, %v1661_v16 }
 0x4f9   :  { %1197 = vmatmul.msk.f32.vlgmr.msra.gmra.mxu2 %vm758_vm5, %v879_v17  ;;  %v868_v17 = vld [vmem:[%s1872_s2 + $0x150] sm:$0xff] }
 0x4fa   :  { %v904_v25 = vrot.slane %v868_v17, 1 }
 0x4fc   :  { %v911_v32 = vsel %vm672_vm2, %v904_v25, %v910_v20 }
 0x4fd   :  { %954 = vmatpush.xpose.msra.mxu1 %v911_v32 }
 0x54f   :  { %v508_v51 = vpop.f32.mrf.mxu0  ;;  %v537_v52 = vpop.f32.mrf.mxu1 }
 0x550   :  { %v591_v55 = vrot.slane %v508_v51, 7  ;;  %v592_v56 = vrot.slane %v537_v52, 7  ;;  %v905_v52 = vsel %vm672_vm2, %v896_v42, %v904_v25 }
 0x551   :  { %955 = vmatpush.xpose.msra.mxu1 %v905_v52  ;;  %v877_v52 = vmul.f32 %v1582_v46, %v1582_v46 }
 0x552   :  { %v627_v62 = vmul.f32 %v591_v55, %v453_v58  ;;  %v628_v0 = vmul.f32 %v592_v56, %v454_v59  ;;  %v862_v58 = vld [vmem:[%s1872_s2 + $0x120] sm:$0xfe] }
 0x553   :  { %v895_v60 = vrot.slane %v862_v58, 1 }
 0x554   :  { %v673_v10 = vrot.slane %v627_v62, 1  ;;  %v676_v11 = vrot.slane %v628_v0, 1 }
 0x557   :  { %v511_v3 = vpop.f32.mrf.mxu0  ;;  %v540_v4 = vpop.f32.mrf.mxu1 }
 0x558   :  { %v594_v7 = vrot.slane %v511_v3, 7  ;;  %v596_v9 = vrot.slane %v540_v4, 7 }
 0x55a   :  { %v595_v18 = vsel %vm590_vm6, %v591_v55, %v594_v7  ;;  %v597_v19 = vsel %vm590_vm6, %v592_v56, %v596_v9 }
 0x55b   :  { %v630_v23 = vmul.f32 %v595_v18, %v456_v6  ;;  %v631_v24 = vmul.f32 %v597_v19, %v457_v8  ;;  %v462_v6 = vld [vmem:[%s1872_s2 + $0x1c8] sm:$0xff]  ;;  %v897_v8 = vsel %vm672_vm2, %v895_v60, %v896_v42  ;;  %v465_v18 = vld [vmem:[%s1872_s2 + $0x1e0] sm:$0x1]  ;;  %v467_v42 = vld [vmem:[%s1872_s2 + $0x1f0] sm:$0x1] }
 0x55c   :  { %v566_v27 = vpop.f32.mrf.mxu2  ;;  %956 = vmatpush.xpose.msra.mxu1 %v897_v8 }
 0x55d   :  { %v674_v29 = vrot.slane %v630_v23, 1  ;;  %v677_v30 = vrot.slane %v631_v24, 1  ;;  %v593_v43 = vrot.slane %v566_v27, 7 }
 0x55f   :  { %v514_v34 = vpop.f32.mrf.mxu0  ;;  %v675_v35 = vsel %vm672_vm2, %v673_v10, %v674_v29  ;;  %v543_v36 = vpop.f32.mrf.mxu1  ;;  %v678_v37 = vsel %vm672_vm2, %v676_v11, %v677_v30  ;;  %v629_v59 = vmul.f32 %v593_v43, %v455_v49  ;;  %v878_v49 = vmul.f32 %v1584_v47, %v1584_v47 }
 0x560   :  { %v600_v31 = vrot.slane %v514_v34, 7  ;;  %791 = vmatmul.f32.vlgmr.msrb.gmra.mxu3 %v675_v35  ;;  %v602_v38 = vrot.slane %v543_v36, 7  ;;  %820 = vmatmul.f32.vlgmr.msrb.gmra.mxu0 %v678_v37  ;;  %v464_v37 = vld [vmem:[%s1872_s2 + $0x1d8] sm:$0xff] }
 0x562   :  { %v601_v44 = vsel %vm590_vm6, %v594_v7, %v600_v31  ;;  %v603_v45 = vsel %vm590_vm6, %v596_v9, %v602_v38  ;;  %v463_v7 = vld [vmem:[%s1872_s2 + $0x1d0] sm:$0xff]  ;;  %v679_v9 = vrot.slane %v629_v59, 1 }
 0x563   :  { %v633_v50 = vmul.f32 %v601_v44, %v459_v39  ;;  %v634_v51 = vmul.f32 %v603_v45, %v460_v40 }
 0x564   :  { %v569_v53 = vpop.f32.mrf.mxu2 }
 0x565   :  { %v598_v55 = vrot.slane %v569_v53, 7  ;;  %v682_v56 = vrot.slane %v633_v50, 1  ;;  %v684_v57 = vrot.slane %v634_v51, 1 }
 0x567   :  { %v599_v61 = vsel %vm590_vm6, %v593_v43, %v598_v55  ;;  %v517_v62 = vpop.f32.mrf.mxu0  ;;  %v683_v0 = vsel %vm672_vm2, %v674_v29, %v682_v56  ;;  %v546_v1 = vpop.f32.mrf.mxu1  ;;  %v685_v2 = vsel %vm672_vm2, %v677_v30, %v684_v57 }
 0x568   :  { %v632_v3 = vmul.f32 %v599_v61, %v458_v54  ;;  %v606_v4 = vrot.slane %v517_v62, 7  ;;  %794 = vmatmul.f32.gmra.mxu3 %v683_v0  ;;  %v608_v5 = vrot.slane %v546_v1, 7  ;;  %823 = vmatmul.f32.gmra.mxu0 %v685_v2 }
 0x56a   :  { %v680_v10 = vrot.slane %v632_v3, 1  ;;  %v607_v11 = vsel %vm590_vm6, %v600_v31, %v606_v4  ;;  %v609_v14 = vsel %vm590_vm6, %v602_v38, %v608_v5  ;;  %v640_v23 = vmul.f32 %v608_v5, %v466_v13 }
 0x56b   :  { %v636_v15 = vmul.f32 %v607_v11, %v462_v6  ;;  %v637_v17 = vmul.f32 %v609_v14, %v463_v7  ;;  %v639_v26 = vmul.f32 %v606_v4, %v465_v18 }
 0x56c   :  { %v572_v19 = vpop.f32.mrf.mxu2  ;;  %v681_v20 = vsel %vm672_vm2, %v679_v9, %v680_v10  ;;  %v696_v32 = vrot.slane %v640_v23, 1  ;;  %v1101_v23 = vld [vmem:[%s1870_s1 + $0x222] sm:$0x7] }
 0x56d   :  { %v604_v22 = vrot.slane %v572_v19, 7  ;;  %1189 = vmatmul.msk.f32.vlgmr.msrb.gmra.mxu1 %vm758_vm5, %v681_v20  ;;  %v688_v24 = vrot.slane %v636_v15, 1  ;;  %v690_v25 = vrot.slane %v637_v17, 1  ;;  %v694_v34 = vrot.slane %v639_v26, 1  ;;  %1208 = vmatpush.xpose.msk.msrb.mxu2 %vm758_vm5, %v1101_v23 }
 0x56f   :  { %v605_v27 = vsel %vm590_vm6, %v598_v55, %v604_v22  ;;  %v689_v28 = vsel %vm672_vm2, %v682_v56, %v688_v24  ;;  %v691_v29 = vsel %vm672_vm2, %v684_v57, %v690_v25  ;;  %v697_v38 = vsel %vm672_vm2, %v690_v25, %v696_v32 }
 0x570   :  { %v635_v30 = vmul.f32 %v605_v27, %v461_v21  ;;  %797 = vmatmul.f32.gmra.mxu3 %v689_v28  ;;  %826 = vmatmul.f32.gmra.mxu0 %v691_v29  ;;  %v695_v40 = vsel %vm672_vm2, %v688_v24, %v694_v34  ;;  %v1222_v24 = vld [vmem:[%s1870_s1 + $0x221] ss:$0 sm:$0xff] }
 0x572   :  { %v686_v33 = vrot.slane %v635_v30, 1 }
 0x574   :  { %v575_v35 = vpop.f32.mrf.mxu2  ;;  %v687_v36 = vsel %vm672_vm2, %v680_v10, %v686_v33 }
 0x575   :  { %v610_v31 = vrot.slane %v575_v35, 7  ;;  %1190 = vmatmul.msk.f32.gmra.mxu1 %vm758_vm5, %v687_v36 }
 0x577   :  { %v611_v39 = vsel %vm590_vm6, %v604_v22, %v610_v31  ;;  %v641_v44 = vmul.f32 %v610_v31, %v467_v42 }
 0x578   :  { %v638_v41 = vmul.f32 %v611_v39, %v464_v37  ;;  %800 = vmatmul.f32.gmra.mxu3 %v695_v40  ;;  %829 = vmatmul.f32.gmra.mxu0 %v697_v38 }
 0x579   :  { %v698_v50 = vrot.slane %v641_v44, 1 }
 0x57a   :  { %v692_v43 = vrot.slane %v638_v41, 1 }
 0x57c   :  { %v693_v45 = vsel %vm672_vm2, %v686_v33, %v692_v43  ;;  %v699_v51 = vsel %vm672_vm2, %v692_v43, %v698_v50  ;;  %v998_v13 = vpop.f32.mrf.mxu2 }
 0x57d   :  { %1191 = vmatmul.msk.f32.gmra.mxu1 %vm758_vm5, %v693_v45 }
 0x580   :  { %977 = vmatmul.f32.vlgmr.msra.gmra.mxu3 %v878_v49  ;;  %1204 = vmatmul.msk.f32.vlgmr.msra.gmra.mxu0 %vm468_vm4, %v1589_v48 }
 0x585   :  { %1192 = vmatmul.msk.f32.gmra.mxu1 %vm758_vm5, %v699_v51 }
 0x588   :  { %1205 = vmatmul.msk.f32.gmra.mxu0 %vm468_vm4, %v1619_v63 }
 0x58d   :  { %957 = vmatmul.f32.vlgmr.msra.gmra.mxu1 %v877_v52 }
 0x590   :  { %1206 = vmatmul.msk.f32.gmra.mxu0 %vm468_vm4, %v1645_v12 }
 0x598   :  { %1207 = vmatmul.msk.f32.gmra.mxu0 %vm468_vm4, %v1661_v16 }
 0x5dd   :  { %v821_v47 = vpop.f32.mrf.mxu0 }
 0x5e3   :  { %v792_v53 = vpop.f32.mrf.mxu3 }
 0x5e4   :  { %v822_v54 = vadd.f32 %v821_v47, %v792_v53 }
 0x5e5   :  { %v824_v56 = vpop.f32.mrf.mxu0 }
 0x5ea   :  { %v850_v55 = vpop.f32.mrf.mxu1 }
 0x5eb   :  { %v851_v57 = vadd.f32 %v850_v55, %v822_v54  ;;  %v795_v58 = vpop.f32.mrf.mxu3  ;;  %v1223_v55 = vld [vmem:[%s1870_s1 + $0x225] ss:$0 sm:$0xff] }
 0x5ec   :  { %v825_v59 = vadd.f32 %v824_v56, %v795_v58 }
 0x5ed   :  { %v827_v0 = vpop.f32.mrf.mxu0 }
 0x5f2   :  { %v853_v60 = vpop.f32.mrf.mxu1 }
 0x5f3   :  { %v854_v61 = vadd.f32 %v853_v60, %v825_v59  ;;  %v798_v62 = vpop.f32.mrf.mxu3 }
 0x5f4   :  { %v828_v46 = vadd.f32 %v827_v0, %v798_v62 }
 0x5f5   :  { %v830_v4 = vpop.f32.mrf.mxu0 }
 0x5fa   :  { %v856_v1 = vpop.f32.mrf.mxu1 }
 0x5fb   :  { %v857_v2 = vadd.f32 %v856_v1, %v828_v46  ;;  %v801_v3 = vpop.f32.mrf.mxu3 }
 0x5fc   :  { %v831_v5 = vadd.f32 %v830_v4, %v801_v3 }
 0x5fd   :  { %v1085_v26 = vpop.f32.mrf.mxu0 }
 0x602   :  { %v859_v6 = vpop.f32.mrf.mxu1 }
 0x603   :  { %v860_v7 = vadd.f32 %v859_v6, %v831_v5  ;;  %v978_v10 = vpop.f32.mrf.mxu3 }
 0x605   :  { %v1088_v33 = vpop.f32.mrf.mxu0 }
 0x60a   :  { %v958_v8 = vpop.f32.mrf.mxu1 }
 0x60b   :  { %v959_v9 = vadd.f32 1e-08, %v958_v8 }
 0x60d   :  { %v979_v11 = vadd.f32 %v978_v10, %v959_v9  ;;  %v1091_v41 = vpop.f32.mrf.mxu0 }
 0x60f   :  { %v999_v14 = vadd.f32 %v998_v13, %v979_v11 }
 0x611   :  { %1224 = vrsqrt.f32 %v999_v14  ;;  %vm1007_vm8 = vweird.f32 %v999_v14 }
 0x615   :  { %v1094_v47 = vpop.f32.mrf.mxu0 }
 0x617   :  { %v1225_v15 = vpop.eup %1224 }
 0x618   :  { %v1002_v17 = vmul.f32 %v1225_v15, %v999_v14  ;;  %vm1008_vm7 = vweird.f32 %v1225_v15 }
 0x619   :  { %vm1009_vm9 = vmor %vm1007_vm8, %vm1008_vm7 }
 0x61a   :  { %v1003_v18 = vmul.f32 %v1225_v15, %v1002_v17 }
 0x61c   :  { %v1004_v19 = vmul.f32 0.5, %v1003_v18 }
 0x61e   :  { %v1005_v20 = vsub.f32 1.5, %v1004_v19 }
 0x620   :  { %v1006_v21 = vmul.f32 %v1225_v15, %v1005_v20 }
 0x622   :  { %v1010_v22 = vsel %vm1009_vm9, %v1225_v15, %v1006_v21 }
 0x623   :  { %1198 = vmatpush.msk.msrb.mxu3 %vm481_vm3, %v1010_v22 }
 0x624   :  { %1199 = vmatmul.msk.f32.vlgmr.msrb.gmra.mxu3 %vm468_vm4, %v1589_v48 }
 0x62c   :  { %1200 = vmatmul.msk.f32.gmra.mxu3 %vm468_vm4, %v1619_v63 }
 0x634   :  { %1201 = vmatmul.msk.f32.gmra.mxu3 %vm468_vm4, %v1645_v12 }
 0x63c   :  { %1202 = vmatmul.msk.f32.gmra.mxu3 %vm468_vm4, %v1661_v16 }
 0x6a7   :  { %v1031_v48 = vpop.f32.mrf.mxu3 }
 0x6a8   :  { %v1044_v25 = vmul.f32 %v1031_v48, %v851_v57 }
 0x6aa   :  { %v1049_v63 = vadd.f32 %v1222_v24, %v1044_v25 }
 0x6ac   :  { %v1053_v27 = vmul.f32 0.2, %v1049_v63 }
 0x6ae   :  { %v1057_v28 = vmax.f32 %v1049_v63, %v1053_v27 }
 0x6af   :  { %v1034_v12 = vpop.f32.mrf.mxu3 }
 0x6b0   :  { %v1045_v29 = vmul.f32 %v1034_v12, %v854_v61  ;;  %v1061_v30 = vmul.f32 1.4142135, %v1057_v28 }
 0x6b2   :  { %v1050_v16 = vadd.f32 %v1222_v24, %v1045_v29  ;;  %v1097_v32 = vmul.f32 %v1085_v26, %v1061_v30 }
 0x6b4   :  { %v1054_v34 = vmul.f32 0.2, %v1050_v16  ;;  %1209 = vmatmul.msk.f32.vlgmr.msrb.gmra.mxu2 %vm758_vm5, %v1097_v32 }
 0x6b6   :  { %v1058_v35 = vmax.f32 %v1050_v16, %v1054_v34 }
 0x6b7   :  { %v1037_v36 = vpop.f32.mrf.mxu3 }
 0x6b8   :  { %v1046_v37 = vmul.f32 %v1037_v36, %v857_v2  ;;  %v1062_v31 = vmul.f32 1.4142135, %v1058_v35 }
 0x6ba   :  { %v1051_v38 = vadd.f32 %v1222_v24, %v1046_v37  ;;  %v1098_v39 = vmul.f32 %v1088_v33, %v1062_v31 }
 0x6bc   :  { %v1055_v40 = vmul.f32 0.2, %v1051_v38  ;;  %1210 = vmatmul.msk.f32.gmra.mxu2 %vm758_vm5, %v1098_v39 }
 0x6be   :  { %v1059_v42 = vmax.f32 %v1051_v38, %v1055_v40 }
 0x6bf   :  { %v1040_v43 = vpop.f32.mrf.mxu3 }
 0x6c0   :  { %v1047_v44 = vmul.f32 %v1040_v43, %v860_v7  ;;  %v1063_v45 = vmul.f32 1.4142135, %v1059_v42 }
 0x6c2   :  { %v1052_v49 = vadd.f32 %v1222_v24, %v1047_v44  ;;  %v1099_v50 = vmul.f32 %v1091_v41, %v1063_v45 }
 0x6c4   :  { %v1056_v51 = vmul.f32 0.2, %v1052_v49  ;;  %1211 = vmatmul.msk.f32.gmra.mxu2 %vm758_vm5, %v1099_v50 }
 0x6c6   :  { %v1060_v52 = vmax.f32 %v1052_v49, %v1056_v51 }
 0x6c8   :  { %v1064_v53 = vmul.f32 1.4142135, %v1060_v52 }
 0x6ca   :  { %v1100_v54 = vmul.f32 %v1094_v47, %v1064_v53 }
 0x6cc   :  { %1212 = vmatmul.msk.f32.gmra.mxu2 %vm758_vm5, %v1100_v54 }
 0x737   :  { %v1136_v56 = vpop.f32.mrf.mxu2 }
 0x738   :  { %v1137_v57 = vadd.f32 %v1223_v55, %v1136_v56 }
 0x73a   :  { %1149 = vst.msk [vmem:[%s1873_s3] sm:$0xff] %vm1148_vm10, %v1137_v57 }
 0x73f   :  { %v1139_v58 = vpop.f32.mrf.mxu2 }
 0x740   :  { %v1140_v59 = vadd.f32 %v1223_v55, %v1139_v58 }
 0x742   :  { %1150 = vst.msk [vmem:[%s1873_s3 + $0x8] sm:$0xff] %vm1148_vm10, %v1140_v59 }
 0x747   :  { %v1142_v60 = vpop.f32.mrf.mxu2 }
 0x748   :  { %v1143_v61 = vadd.f32 %v1223_v55, %v1142_v60 }
 0x74a   :  { %1151 = vst.msk [vmem:[%s1873_s3 + $0x10] sm:$0xff] %vm1148_vm10, %v1143_v61 }
 0x74f   :  { %v1145_v62 = vpop.f32.mrf.mxu2 }
 0x750   :  { %v1146_v0 = vadd.f32 %v1223_v55, %v1145_v62 }
 0x752   :  { %1152 = vst.msk [vmem:[%s1873_s3 + $0x18] sm:$0xff] %vm1148_vm10, %v1146_v0 }

</bundles_post_ra>
